<compile_context>
chip_gen: v6e
topology: v6e:2x2x1
jax: 0.10.0
libtpu: 0.0.40
codegen_flags: <defaults>
</compile_context>

<pallas_src>
import jax
import jax.numpy as jnp
import numpy as np
from jax.experimental import pallas as pl
from jax.experimental.pallas import tpu as pltpu

ACTION_EPS = 0.0001

FEATURE_NUM = 64
SEQ_LEN = 8          # L (history length of the NCL input)
A1_DIM = 6           # action_dim
A2_DIM = 5
N_CHANNELS = 7
MERGE_DIM = FEATURE_NUM * (4 + 2 * SEQ_LEN + A1_DIM)   # 1664 = 13 * 128
HID_PAD = 256        # 3 * 64 fused hidden width, zero-padded to the MXU granule
OUT_PAD = 128        # a1(6) | a2(5) | a3(1) | zeros  -> one lane-dense store


def _round_up(n, m):
    return ((n + m - 1) // m) * m


# ----------------------------------------------------------------------------- kernel
def actor_kernel(xg_ref, wu_ref, bu_ref, w1_ref, b1_ref, w2_ref, b2_ref, out_ref):
    # Fused fc1/fc2/conv3/conv4/conv5/fc6/fc7 + ReLU + concat:
    # every merged feature is relu(w * x_scalar + b).
    merge = jnp.maximum(xg_ref[...] * wu_ref[...] + bu_ref[...], 0.0)        # [TB, 1664] f32

    # Fused bitrate/max_buffer/auxiliary action Linears: one bf16 MXU pass.
    h = jnp.dot(merge.astype(jnp.bfloat16), w1_ref[...],
                preferred_element_type=jnp.float32) + b1_ref[...]            # [TB, 256]  f32

    # Fused (block-diagonal) pi heads: one f32 MXU pass -> lane-dense logits row.
    logits = jnp.dot(h, w2_ref[...],
                     preferred_element_type=jnp.float32) + b2_ref[...]       # [TB, 128]  f32

    lane = jax.lax.broadcasted_iota(jnp.int32, logits.shape, 1)
    m1 = lane < A1_DIM
    m2 = jnp.logical_and(lane >= A1_DIM, lane < A1_DIM + A2_DIM)

    def seg_softmax(mask):
        neg = jnp.where(mask, logits, jnp.float32(-1e30))
        mx = jnp.max(neg, axis=-1, keepdims=True)
        e = jnp.where(mask, jnp.exp(logits - mx), 0.0)
        p = e / jnp.sum(e, axis=-1, keepdims=True)
        return jnp.clip(p, ACTION_EPS, 1.0 - ACTION_EPS)

    # a1 in lanes 0:6 (softmax+clamp), a2 in 6:11 (softmax+clamp), a3 raw at lane 11.
    out_ref[...] = jnp.where(m1, seg_softmax(m1),
                             jnp.where(m2, seg_softmax(m2), logits))


# ----------------------------------------------------------------------------- param packing (one-time)
def pack_params(p):
    """Static glue: pack per-unit scalars and fuse/pad the big Linears. Run ONCE."""
    L, F, A1 = SEQ_LEN, FEATURE_NUM, A1_DIM
    w_unit = jnp.concatenate(
        [p["w1"], p["w2"],
         jnp.repeat(p["w3"], L), jnp.repeat(p["w4"], L),
         jnp.repeat(p["w5"], A1),
         p["w6"], p["w7"]]).astype(jnp.float32)[None, :]                      # [1, 1664]
    b_unit = jnp.concatenate(
        [p["b1"], p["b2"],
         jnp.repeat(p["b3"], L), jnp.repeat(p["b4"], L),
         jnp.repeat(p["b5"], A1),
         p["b6"], p["b7"]]).astype(jnp.float32)[None, :]                      # [1, 1664]

    # Fused first-stage weight [1664, 256] (bf16) and bias [1, 256].
    W1 = jnp.zeros((MERGE_DIM, HID_PAD), jnp.float32)
    W1 = W1.at[:, 0:F].set(p["W_ba"])
    W1 = W1.at[:, F:2 * F].set(p["W_mba"])
    W1 = W1.at[:, 2 * F:3 * F].set(p["W_aa"])
    b1 = jnp.zeros((1, HID_PAD), jnp.float32)
    b1 = b1.at[0, 0:F].set(p["b_ba"])
    b1 = b1.at[0, F:2 * F].set(p["b_mba"])
    b1 = b1.at[0, 2 * F:3 * F].set(p["b_aa"])

    # Fused block-diagonal pi-head weight [256, 128] and bias [1, 128].
    W2 = jnp.zeros((HID_PAD, OUT_PAD), jnp.float32)
    W2 = W2.at[0:F, 0:A1_DIM].set(p["W_bph"])
    W2 = W2.at[F:2 * F, A1_DIM:A1_DIM + A2_DIM].set(p["W_mph"])
    W2 = W2.at[2 * F:3 * F, A1_DIM + A2_DIM:A1_DIM + A2_DIM + 1].set(p["W_aph"])
    b2 = jnp.zeros((1, OUT_PAD), jnp.float32)
    b2 = b2.at[0, 0:A1_DIM].set(p["b_bph"])
    b2 = b2.at[0, A1_DIM:A1_DIM + A2_DIM].set(p["b_mph"])
    b2 = b2.at[0, A1_DIM + A2_DIM].set(p["b_aph"][0])

    return {"w_unit": w_unit, "b_unit": b_unit,
            "W1": W1.astype(jnp.bfloat16), "b1": b1, "W2": W2, "b2": b2}


# ----------------------------------------------------------------------------- wrapper
def actor_forward(x, packed, *, block_b=256):
    """x: [B, 7, SEQ_LEN] float32 (NCL, same as the PyTorch module)."""
    B, C, L = x.shape
    assert C == N_CHANNELS and L == SEQ_LEN
    F = FEATURE_NUM

    # Gather/tile the NCL input so each of the 1664 merged features sees the
    # scalar it reads (pure indexing glue, no FLOPs).
    # TODO(synk): build xg inside the kernel from a [B, 56] input to cut input DMA
    # ~30x; only matters once B is large enough that activations rival the weights.
    xg = jnp.concatenate(
        [
            jnp.tile(x[:, 0, L - 1:L], (1, F)),        # fc1   reads x[b,0,-1]
            jnp.tile(x[:, 1, L - 1:L], (1, F)),        # fc2   reads x[b,1,-1]
            jnp.tile(x[:, 2, :], (1, F)),              # conv3: flat index f*L+l -> x[b,2,l]
            jnp.tile(x[:, 3, :], (1, F)),              # conv4
            jnp.tile(x[:, 4, :A1_DIM], (1, F)),        # conv5: flat index f*A1+l -> x[b,4,l]
            jnp.tile(x[:, 5, L - 1:L], (1, F)),        # fc6
            jnp.tile(x[:, 6, L - 1:L], (1, F)),        # fc7
        ],
        axis=1,
    ).astype(jnp.float32)                              # [B, 1664]

    # Pad batch to a multiple of 8 sublanes and pick the batch tile.
    bp8 = _round_up(B, 8)
    tb = min(_round_up(block_b, 8), bp8)
    bp = _round_up(bp8, tb)
    if bp > B:
        xg = jnp.pad(xg, ((0, bp - B), (0, 0)))

    out = pl.pallas_call(
        actor_kernel,
        out_shape=jax.ShapeDtypeStruct((bp, OUT_PAD), jnp.float32),
        grid_spec=pltpu.PrefetchScalarGridSpec(
            num_scalar_prefetch=0,
            grid=(bp // tb,),
            in_specs=[
                pl.BlockSpec((tb, MERGE_DIM), lambda i: (i, 0)),     # xg tile (pipelined)
                pl.BlockSpec((1, MERGE_DIM), lambda i: (0, 0)),      # w_unit  (resident)
                pl.BlockSpec((1, MERGE_DIM), lambda i: (0, 0)),      # b_unit  (resident)
                pl.BlockSpec((MERGE_DIM, HID_PAD), lambda i: (0, 0)),  # fused W1 (resident)
                pl.BlockSpec((1, HID_PAD), lambda i: (0, 0)),        # fused b1
                pl.BlockSpec((HID_PAD, OUT_PAD), lambda i: (0, 0)),  # fused W2
                pl.BlockSpec((1, OUT_PAD), lambda i: (0, 0)),        # fused b2
            ],
            out_specs=pl.BlockSpec((tb, OUT_PAD), lambda i: (i, 0)),
        ),
        compiler_params=pltpu.CompilerParams(
            dimension_semantics=("parallel",)),
    )(xg, packed["w_unit"], packed["b_unit"],
      packed["W1"], packed["b1"], packed["W2"], packed["b2"])

    a1 = out[:B, 0:A1_DIM]
    a2 = out[:B, A1_DIM:A1_DIM + A2_DIM]
    a3 = out[:B, A1_DIM + A2_DIM:A1_DIM + A2_DIM + 1]
    return a1, a2, a3


# ----------------------------------------------------------------------------- params
def init_params(key):
    F, M = FEATURE_NUM, MERGE_DIM
    ks = iter(jax.random.split(key, 32))
    g = lambda shape, s: (jax.random.normal(next(ks), shape, jnp.float32) * s)
    p = {}
    for name in ["1", "2", "3", "4", "5", "6", "7"]:
        p[f"w{name}"] = g((F,), 0.1)       # Linear(1,F) / Conv1d(1,F,1) weight (flattened)
        p[f"b{name}"] = g((F,), 0.1)
    # big Linears stored pre-transposed as [in, out]
    p["W_ba"] = g((M, F), 0.02);  p["b_ba"] = g((F,), 0.05)
    p["W_mba"] = g((M, F), 0.02); p["b_mba"] = g((F,), 0.05)
    p["W_aa"] = g((M, F), 0.02);  p["b_aa"] = g((F,), 0.05)
    p["W_bph"] = g((F, A1_DIM), 0.1); p["b_bph"] = g((A1_DIM,), 0.05)
    p["W_mph"] = g((F, A2_DIM), 0.1); p["b_mph"] = g((A2_DIM,), 0.05)
    p["W_aph"] = g((F, 1), 0.1);      p["b_aph"] = g((1,), 0.05)
    return p


# ----------------------------------------------------------------------------- reference
def reference_forward(x, p):
    """Pure-JAX mirror of the PyTorch forward (for verification), f32-exact matmuls."""
    B = x.shape[0]
    hp = jax.lax.Precision.HIGHEST
    relu = lambda v: jnp.maximum(v, 0.0)
    s1 = relu(x[:, 0, -1][:, None] * p["w1"][None, :] + p["b1"][None, :])
    s2 = relu(x[:, 1, -1][:, None] * p["w2"][None, :] + p["b2"][None, :])
    s3 = relu(x[:, 2, :][:, None, :] * p["w3"][None, :, None] + p["b3"][None, :, None]).reshape(B, -1)
    s4 = relu(x[:, 3, :][:, None, :] * p["w4"][None, :, None] + p["b4"][None, :, None]).reshape(B, -1)
    s5 = relu(x[:, 4, :A1_DIM][:, None, :] * p["w5"][None, :, None] + p["b5"][None, :, None]).reshape(B, -1)
    s6 = relu(x[:, 5, -1][:, None] * p["w6"][None, :] + p["b6"][None, :])
    s7 = relu(x[:, 6, -1][:, None] * p["w7"][None, :] + p["b7"][None, :])
    merge = jnp.concatenate([s1, s2, s3, s4, s5, s6, s7], axis=1)

    h1 = jnp.dot(merge, p["W_ba"], precision=hp) + p["b_ba"]
    a1 = jax.nn.softmax(jnp.dot(h1, p["W_bph"], precision=hp) + p["b_bph"], axis=-1)
    a1 = jnp.clip(a1, ACTION_EPS, 1.0 - ACTION_EPS)
    h2 = jnp.dot(merge, p["W_mba"], precision=hp) + p["b_mba"]
    a2 = jax.nn.softmax(jnp.dot(h2, p["W_mph"], precision=hp) + p["b_mph"], axis=-1)
    a2 = jnp.clip(a2, ACTION_EPS, 1.0 - ACTION_EPS)
    h3 = jnp.dot(merge, p["W_aa"], precision=hp) + p["b_aa"]
    a3 = jnp.dot(h3, p["W_aph"], precision=hp) + p["b_aph"]
    return a1, a2, a3


# ----------------------------------------------------------------------------- main
if __name__ == "__main__":
    key = jax.random.PRNGKey(0)
    pkey, xkey = jax.random.split(key)
    params = init_params(pkey)
    packed = pack_params(params)      # one-time static packing, hoisted out of the call path
    packed = jax.tree_util.tree_map(lambda a: jax.block_until_ready(a), packed)

    B = 2
    x = jax.random.normal(xkey, (B, N_CHANNELS, SEQ_LEN), jnp.float32)

    fwd = jax.jit(actor_forward)
    a1, a2, a3 = fwd(x, packed)
    jax.block_until_ready((a1, a2, a3))

    r1, r2, r3 = reference_forward(x, params)
    assert a1.shape == (B, A1_DIM) and a2.shape == (B, A2_DIM) and a3.shape == (B, 1)
    max_err = max(float(jnp.max(jnp.abs(a1 - r1))),
                  float(jnp.max(jnp.abs(a2 - r2))),
                  float(jnp.max(jnp.abs(a3 - r3))))
    assert np.isfinite(max_err) and max_err < 5e-3, f"mismatch vs reference: {max_err}"

    print("KERNEL_OK")
</pallas_src>

<mosaic_0001>
module attributes {stable_mosaic.version = 11 : i64} {
  func.func @actor_kernel(%arg0: i32, %arg1: memref<8x1664xf32, #tpu.memory_space<vmem>>, %arg2: memref<1x1664xf32, #tpu.memory_space<vmem>>, %arg3: memref<1x1664xf32, #tpu.memory_space<vmem>>, %arg4: memref<1664x256xbf16, #tpu.memory_space<vmem>>, %arg5: memref<1x256xf32, #tpu.memory_space<vmem>>, %arg6: memref<256x128xf32, #tpu.memory_space<vmem>>, %arg7: memref<1x128xf32, #tpu.memory_space<vmem>>, %arg8: memref<8x128xf32, #tpu.memory_space<vmem>>) attributes {dimension_semantics = [#tpu.dimension_semantics<parallel>], iteration_bounds = array<i64: 1>, scalar_prefetch = 0 : i64, scratch_operands = 0 : i64, tpu.core_type = #tpu.core_type<tc>, window_params = [{transform_indices = @transform_0, window_bounds = array<i64: 8, 1664>}, {pipeline_mode = #tpu.pipeline_mode<synchronous>, transform_indices = @transform_1, window_bounds = array<i64: 1, 1664>}, {pipeline_mode = #tpu.pipeline_mode<synchronous>, transform_indices = @transform_2, window_bounds = array<i64: 1, 1664>}, {pipeline_mode = #tpu.pipeline_mode<synchronous>, transform_indices = @transform_3, window_bounds = array<i64: 1664, 256>}, {pipeline_mode = #tpu.pipeline_mode<synchronous>, transform_indices = @transform_4, window_bounds = array<i64: 1, 256>}, {pipeline_mode = #tpu.pipeline_mode<synchronous>, transform_indices = @transform_5, window_bounds = array<i64: 256, 128>}, {pipeline_mode = #tpu.pipeline_mode<synchronous>, transform_indices = @transform_6, window_bounds = array<i64: 1, 128>}, {transform_indices = @transform_7, window_bounds = array<i64: 8, 128>}]} {
    %c0 = arith.constant 0 : index
    %c0_0 = arith.constant 0 : index
    %0 = vector.load %arg1[%c0, %c0_0] : memref<8x1664xf32, #tpu.memory_space<vmem>>, vector<8x1664xf32>
    %c0_1 = arith.constant 0 : index
    %c0_2 = arith.constant 0 : index
    %1 = vector.load %arg2[%c0_1, %c0_2] : memref<1x1664xf32, #tpu.memory_space<vmem>>, vector<1x1664xf32>
    %2 = vector.broadcast %1 : vector<1x1664xf32> to vector<8x1664xf32>
    %3 = arith.mulf %0, %2 : vector<8x1664xf32>
    %c0_3 = arith.constant 0 : index
    %c0_4 = arith.constant 0 : index
    %4 = vector.load %arg3[%c0_3, %c0_4] : memref<1x1664xf32, #tpu.memory_space<vmem>>, vector<1x1664xf32>
    %5 = vector.broadcast %4 : vector<1x1664xf32> to vector<8x1664xf32>
    %6 = arith.addf %3, %5 : vector<8x1664xf32>
    %cst = arith.constant 0.000000e+00 : f32
    %7 = vector.broadcast %cst : f32 to vector<8x1664xf32>
    %8 = arith.maximumf %6, %7 : vector<8x1664xf32>
    %9 = arith.truncf %8 : vector<8x1664xf32> to vector<8x1664xbf16>
    %c0_5 = arith.constant 0 : index
    %c0_6 = arith.constant 0 : index
    %10 = vector.load %arg4[%c0_5, %c0_6] : memref<1664x256xbf16, #tpu.memory_space<vmem>>, vector<1664x256xbf16>
    %cst_7 = arith.constant dense<0.000000e+00> : vector<8x256xf32>
    %11 = tpu.matmul %9, %10, %cst_7 {dimension_numbers = #tpu.dot_dimension_numbers<[1], [0], [0], [1], [0, 0, 1, 1], [], []>} : vector<8x1664xbf16>, vector<1664x256xbf16>, vector<8x256xf32> -> vector<8x256xf32>
    %c0_8 = arith.constant 0 : index
    %c0_9 = arith.constant 0 : index
    %12 = vector.load %arg5[%c0_8, %c0_9] : memref<1x256xf32, #tpu.memory_space<vmem>>, vector<1x256xf32>
    %13 = vector.broadcast %12 : vector<1x256xf32> to vector<8x256xf32>
    %14 = arith.addf %11, %13 : vector<8x256xf32>
    %c0_10 = arith.constant 0 : index
    %c0_11 = arith.constant 0 : index
    %15 = vector.load %arg6[%c0_10, %c0_11] : memref<256x128xf32, #tpu.memory_space<vmem>>, vector<256x128xf32>
    %cst_12 = arith.constant dense<0.000000e+00> : vector<8x128xf32>
    %16 = tpu.matmul %14, %15, %cst_12 {dimension_numbers = #tpu.dot_dimension_numbers<[1], [0], [0], [1], [0, 0, 1, 1], [], []>} : vector<8x256xf32>, vector<256x128xf32>, vector<8x128xf32> -> vector<8x128xf32>
    %c0_13 = arith.constant 0 : index
    %c0_14 = arith.constant 0 : index
    %17 = vector.load %arg7[%c0_13, %c0_14] : memref<1x128xf32, #tpu.memory_space<vmem>>, vector<1x128xf32>
    %18 = vector.broadcast %17 : vector<1x128xf32> to vector<8x128xf32>
    %19 = arith.addf %16, %18 : vector<8x128xf32>
    %20 = tpu.iota {dimensions = array<i32: 1>} : vector<8x128xi32>
    %c6_i32 = arith.constant 6 : i32
    %21 = vector.broadcast %c6_i32 : i32 to vector<8x128xi32>
    %22 = arith.cmpi slt, %20, %21 : vector<8x128xi32>
    %c6_i32_15 = arith.constant 6 : i32
    %23 = vector.broadcast %c6_i32_15 : i32 to vector<8x128xi32>
    %24 = arith.cmpi sge, %20, %23 : vector<8x128xi32>
    %c11_i32 = arith.constant 11 : i32
    %25 = vector.broadcast %c11_i32 : i32 to vector<8x128xi32>
    %26 = arith.cmpi slt, %20, %25 : vector<8x128xi32>
    %27 = arith.andi %24, %26 : vector<8x128xi1>
    %cst_16 = arith.constant -1.000000e+30 : f32
    %28 = vector.broadcast %cst_16 : f32 to vector<8x128xf32>
    %29 = arith.select %22, %19, %28 : vector<8x128xi1>, vector<8x128xf32>
    %cst_17 = arith.constant dense<0xFF800000> : vector<8xf32>
    %30 = vector.multi_reduction <maximumf>, %29, %cst_17 [1] : vector<8x128xf32> to vector<8xf32>
    %31 = vector.shape_cast %30 : vector<8xf32> to vector<8x1xf32>
    %32 = vector.broadcast %31 : vector<8x1xf32> to vector<8x128xf32>
    %33 = arith.subf %19, %32 : vector<8x128xf32>
    %34 = math.exp %33 : vector<8x128xf32>
    %cst_18 = arith.constant 0.000000e+00 : f32
    %35 = vector.broadcast %cst_18 : f32 to vector<8x128xf32>
    %36 = arith.select %22, %34, %35 : vector<8x128xi1>, vector<8x128xf32>
    %cst_19 = arith.constant dense<0.000000e+00> : vector<8xf32>
    %37 = vector.multi_reduction <add>, %36, %cst_19 [1] : vector<8x128xf32> to vector<8xf32>
    %38 = vector.shape_cast %37 : vector<8xf32> to vector<8x1xf32>
    %39 = vector.broadcast %38 : vector<8x1xf32> to vector<8x128xf32>
    %40 = arith.divf %36, %39 : vector<8x128xf32>
    %cst_20 = arith.constant 9.99999974E-5 : f32
    %cst_21 = arith.constant 0.999899983 : f32
    %41 = vector.broadcast %cst_20 : f32 to vector<8x128xf32>
    %42 = arith.maximumf %41, %40 : vector<8x128xf32>
    %43 = vector.broadcast %cst_21 : f32 to vector<8x128xf32>
    %44 = arith.minimumf %43, %42 : vector<8x128xf32>
    %cst_22 = arith.constant -1.000000e+30 : f32
    %45 = vector.broadcast %cst_22 : f32 to vector<8x128xf32>
    %46 = arith.select %27, %19, %45 : vector<8x128xi1>, vector<8x128xf32>
    %cst_23 = arith.constant dense<0xFF800000> : vector<8xf32>
    %47 = vector.multi_reduction <maximumf>, %46, %cst_23 [1] : vector<8x128xf32> to vector<8xf32>
    %48 = vector.shape_cast %47 : vector<8xf32> to vector<8x1xf32>
    %49 = vector.broadcast %48 : vector<8x1xf32> to vector<8x128xf32>
    %50 = arith.subf %19, %49 : vector<8x128xf32>
    %51 = math.exp %50 : vector<8x128xf32>
    %cst_24 = arith.constant 0.000000e+00 : f32
    %52 = vector.broadcast %cst_24 : f32 to vector<8x128xf32>
    %53 = arith.select %27, %51, %52 : vector<8x128xi1>, vector<8x128xf32>
    %cst_25 = arith.constant dense<0.000000e+00> : vector<8xf32>
    %54 = vector.multi_reduction <add>, %53, %cst_25 [1] : vector<8x128xf32> to vector<8xf32>
    %55 = vector.shape_cast %54 : vector<8xf32> to vector<8x1xf32>
    %56 = vector.broadcast %55 : vector<8x1xf32> to vector<8x128xf32>
    %57 = arith.divf %53, %56 : vector<8x128xf32>
    %cst_26 = arith.constant 9.99999974E-5 : f32
    %cst_27 = arith.constant 0.999899983 : f32
    %58 = vector.broadcast %cst_26 : f32 to vector<8x128xf32>
    %59 = arith.maximumf %58, %57 : vector<8x128xf32>
    %60 = vector.broadcast %cst_27 : f32 to vector<8x128xf32>
    %61 = arith.minimumf %60, %59 : vector<8x128xf32>
    %62 = arith.select %27, %61, %19 : vector<8x128xi1>, vector<8x128xf32>
    %63 = arith.select %22, %44, %62 : vector<8x128xi1>, vector<8x128xf32>
    %c0_28 = arith.constant 0 : index
    %c0_29 = arith.constant 0 : index
    %64 = vector.load %arg8[%c0_28, %c0_29] : memref<8x128xf32, #tpu.memory_space<vmem>>, vector<8x128xf32>
    tpu.vector_store %arg8[%c0_28, %c0_29], %63 {strides = array<i32>} : memref<8x128xf32, #tpu.memory_space<vmem>>, vector<8x128xf32>,
    return
  }
  func.func @transform_0(%arg0: i32) -> (i32, i32) {
    %c0_i32 = arith.constant 0 : i32
    %c0_i32_0 = arith.constant 0 : i32
    return %arg0, %c0_i32 : i32, i32
  }
  func.func @transform_1(%arg0: i32) -> (i32, i32) {
    %c0_i32 = arith.constant 0 : i32
    %c0_i32_0 = arith.constant 0 : i32
    %c0_i32_1 = arith.constant 0 : i32
    return %c0_i32, %c0_i32_0 : i32, i32
  }
  func.func @transform_2(%arg0: i32) -> (i32, i32) {
    %c0_i32 = arith.constant 0 : i32
    %c0_i32_0 = arith.constant 0 : i32
    %c0_i32_1 = arith.constant 0 : i32
    return %c0_i32, %c0_i32_0 : i32, i32
  }
  func.func @transform_3(%arg0: i32) -> (i32, i32) {
    %c0_i32 = arith.constant 0 : i32
    %c0_i32_0 = arith.constant 0 : i32
    %c0_i32_1 = arith.constant 0 : i32
    return %c0_i32, %c0_i32_0 : i32, i32
  }
  func.func @transform_4(%arg0: i32) -> (i32, i32) {
    %c0_i32 = arith.constant 0 : i32
    %c0_i32_0 = arith.constant 0 : i32
    %c0_i32_1 = arith.constant 0 : i32
    return %c0_i32, %c0_i32_0 : i32, i32
  }
  func.func @transform_5(%arg0: i32) -> (i32, i32) {
    %c0_i32 = arith.constant 0 : i32
    %c0_i32_0 = arith.constant 0 : i32
    %c0_i32_1 = arith.constant 0 : i32
    return %c0_i32, %c0_i32_0 : i32, i32
  }
  func.func @transform_6(%arg0: i32) -> (i32, i32) {
    %c0_i32 = arith.constant 0 : i32
    %c0_i32_0 = arith.constant 0 : i32
    %c0_i32_1 = arith.constant 0 : i32
    return %c0_i32, %c0_i32_0 : i32, i32
  }
  func.func @transform_7(%arg0: i32) -> (i32, i32) {
    %c0_i32 = arith.constant 0 : i32
    %c0_i32_0 = arith.constant 0 : i32
    return %arg0, %c0_i32 : i32, i32
  }
}

</mosaic_0001>

<bundles_post_ra>
// kernel: tile.39
= control target key start
LH: loop header
LB: loop body
LE: loop exit
PB: predicated region body
PF: predicated region fallthrough
CT: control target
= control target key end

     0   :  { %s23_s8 = smov 6  ;;  %vm25_vm0 = vcmask 1042433   ;;  %s28_s9 = smov 24  ;;  %vm30_vm1 = vcmask 1044483   ;;  %vm35_vm2 = vcmask 1046533   ;;  %vm39_vm3 = vcmask 1047559   ;;  %s942_s0 = inlined_call_operand.vmem [shape: f32[2,64,8], index: 0, kind: input, shape index: {}]   ;;  %s943_s1 = inlined_call_operand.vmem [shape: f32[2,512], index: 1, kind: output, shape index: {}]  }
   0x1   :  { %v515_v0 = vld [vmem:[%s942_s0 + $0xf] sm:$0x1]   ;;  %s33_s14 = smov 96  ;;  %v519_v5 = vld [vmem:[%s942_s0 + $0x78] sm:$0x80]   ;;  %s85_s21 = smov 6 }
   0x2   :  { %v516_v1 = vld [vmem:[%s942_s0 + $0x7f] ss:$-48 sm:%s23_s8]   ;;  %v525_v7 = vld [vmem:[%s942_s0 + $0xd] sm:$0x1]   ;;  %s90_s22 = smov 24  ;;  %s95_s29 = smov 96 }
   0x3   :  { %v517_v2 = vld [vmem:[%s942_s0 + $0xef] ss:$-48 sm:%s28_s9]   ;;  %v26_v3 = vsel %vm25_vm0, %v516_v1, %v515_v0  ;;  %v529_v8 = vld [vmem:[%s942_s0 + $0x76] sm:$0x80]   ;;  %v520_v15 = vld [vmem:[%s942_s0 + $0xe] sm:$0x1]  }
   0x4   :  { %v518_v4 = vld [vmem:[%s942_s0 + $0x15f] ss:$-48 sm:%s33_s14]   ;;  %v31_v6 = vsel %vm30_vm1, %v517_v2, %v26_v3  ;;  %v526_v10 = vld [vmem:[%s942_s0 + $0x7d] ss:$-48 sm:%s85_s21]   ;;  %s54_s5 = smov 6  ;;  %s59_s6 = smov 24 }
   0x5   :  { %v36_v9 = vsel %vm35_vm2, %v518_v4, %v31_v6  ;;  %v527_v11 = vld [vmem:[%s942_s0 + $0xed] ss:$-48 sm:%s90_s22]   ;;  %v88_v13 = vsel %vm25_vm0, %v526_v10, %v525_v7  ;;  %s608_s7 = smov 120   ;;  %v521_v17 = vld [vmem:[%s942_s0 + $0x7e] ss:$-48 sm:%s54_s5]   ;;  %s64_s10 = smov 96 }
   0x6   :  { %v40_v12 = vsel %vm39_vm3, %v519_v5, %v36_v9  ;;  %v528_v14 = vld [vmem:[%s942_s0 + $0x15d] ss:$-48 sm:%s95_s29]   ;;  %v93_v16 = vsel %vm30_vm1, %v527_v11, %v88_v13  ;;  %v524_v18 = vld [vmem:[%s942_s0 + $0x77] sm:$0x80]   ;;  %v57_v20 = vsel %vm25_vm0, %v521_v17, %v520_v15  ;;  %s116_s17 = smov 6  ;;  %s121_s18 = smov 24 }
   0x7   :  { %41 = vrot.lane.b32.xlu0 %v40_v12, %s608_s7  ;;  %v98_v19 = vsel %vm35_vm2, %v528_v14, %v93_v16  ;;  %v522_v21 = vld [vmem:[%s942_s0 + $0xee] ss:$-48 sm:%s59_s6]   ;;  %v530_v25 = vld [vmem:[%s942_s0 + $0xc] sm:$0x1]   ;;  %s126_s23 = smov 96  ;;  %s609_s24 = smov 104  }
   0x8   :  { %v523_v22 = vld [vmem:[%s942_s0 + $0x15e] ss:$-48 sm:%s64_s10]   ;;  %v102_v23 = vsel %vm39_vm3, %v529_v8, %v98_v19  ;;  %v62_v24 = vsel %vm30_vm1, %v522_v21, %v57_v20  ;;  %v531_v26 = vld [vmem:[%s942_s0 + $0x7c] ss:$-48 sm:%s116_s17]   ;;  %s147_s29 = smov 6  ;;  %s152_s30 = smov 24 }
   0x9   :  { %103 = vrot.lane.b32.xlu1 %v102_v23, %s609_s24  ;;  %v67_v27 = vsel %vm35_vm2, %v523_v22, %v62_v24  ;;  %v119_v28 = vsel %vm25_vm0, %v531_v26, %v530_v25  ;;  %v532_v29 = vld [vmem:[%s942_s0 + $0xec] ss:$-48 sm:%s121_s18]   ;;  %v535_v34 = vld [vmem:[%s942_s0 + $0xb] sm:$0x1]   ;;  %s157_s6 = smov 96  ;;  %s610_s7 = smov 112  }
   0xa   :  { %v534_v30 = vld [vmem:[%s942_s0 + $0x75] sm:$0x80]   ;;  %v71_v31 = vsel %vm39_vm3, %v524_v18, %v67_v27  ;;  %v124_v32 = vsel %vm30_vm1, %v532_v29, %v119_v28  ;;  %v536_v36 = vld [vmem:[%s942_s0 + $0x7b] ss:$-48 sm:%s147_s29]   ;;  %s178_s12 = smov 6  ;;  %s183_s13 = smov 24 }
   0xb   :  { %v533_v33 = vld [vmem:[%s942_s0 + $0x15c] ss:$-48 sm:%s126_s23]   ;;  %72 = vrot.lane.b32.xlu0 %v71_v31, %s610_s7  ;;  %v539_v37 = vld [vmem:[%s942_s0 + $0x74] sm:$0x80]   ;;  %v150_v39 = vsel %vm25_vm0, %v536_v36, %v535_v34  ;;  %s188_s18 = smov 96  ;;  %s611_s19 = smov 96  }
   0xc   :  { %v129_v35 = vsel %vm35_vm2, %v533_v33, %v124_v32  ;;  %v537_v40 = vld [vmem:[%s942_s0 + $0xeb] ss:$-48 sm:%s152_s30]   ;;  %v540_v43 = vld [vmem:[%s942_s0 + $0xa] sm:$0x1]   ;;  %s209_s24 = smov 6  ;;  %s214_s25 = smov 24 }
   0xd   :  { %v133_v38 = vsel %vm39_vm3, %v534_v30, %v129_v35  ;;  %v538_v41 = vld [vmem:[%s942_s0 + $0x15b] ss:$-48 sm:%s157_s6]   ;;  %v155_v42 = vsel %vm30_vm1, %v537_v40, %v150_v39  ;;  %v541_v44 = vld [vmem:[%s942_s0 + $0x7a] ss:$-48 sm:%s178_s12]   ;;  %s219_s30 = smov 96  ;;  %s612_s8 = smov 88  }
   0xe   :  { %134 = vrot.lane.b32.xlu1 %v133_v38, %s611_s19  ;;  %v160_v45 = vsel %vm35_vm2, %v538_v41, %v155_v42  ;;  %v181_v46 = vsel %vm25_vm0, %v541_v44, %v540_v43  ;;  %v542_v47 = vld [vmem:[%s942_s0 + $0xea] ss:$-48 sm:%s183_s13]   ;;  %v545_v52 = vld [vmem:[%s942_s0 + $0x9] sm:$0x1]   ;;  %s240_s13 = smov 6  ;;  %s245_s14 = smov 24 }
   0xf   :  { %v543_v48 = vld [vmem:[%s942_s0 + $0x15a] ss:$-48 sm:%s188_s18]   ;;  %v164_v49 = vsel %vm39_vm3, %v539_v37, %v160_v45  ;;  %v186_v50 = vsel %vm30_vm1, %v542_v47, %v181_v46  ;;  %v546_v53 = vld [vmem:[%s942_s0 + $0x79] ss:$-48 sm:%s209_s24]   ;;  %s250_s19 = smov 96  ;;  %s613_s20 = smov 80  }
  0x10   :  { %v544_v51 = vld [vmem:[%s942_s0 + $0x73] sm:$0x80]   ;;  %165 = vrot.lane.b32.xlu0 %v164_v49, %s612_s8  ;;  %v191_v54 = vsel %vm35_vm2, %v543_v48, %v186_v50  ;;  %v212_v55 = vsel %vm25_vm0, %v546_v53, %v545_v52  ;;  %v547_v56 = vld [vmem:[%s942_s0 + $0xe9] ss:$-48 sm:%s214_s25]   ;;  %s271_s25 = smov 6  ;;  %s276_s26 = smov 24 }
  0x11   :  { %v549_v57 = vld [vmem:[%s942_s0 + $0x72] sm:$0x80]   ;;  %v195_v58 = vsel %vm39_vm3, %v544_v51, %v191_v54  ;;  %v217_v59 = vsel %vm30_vm1, %v547_v56, %v212_v55  ;;  %v550_v61 = vld [vmem:[%s942_s0 + $0x8] sm:$0x1]   ;;  %v554_v0 = vld [vmem:[%s942_s0 + $0x71] sm:$0x80]  }
  0x12   :  { %v548_v60 = vld [vmem:[%s942_s0 + $0x159] ss:$-48 sm:%s219_s30]   ;;  %196 = vrot.lane.b32.xlu1 %v195_v58, %s613_s20  ;;  %s281_s2 = smov 96  ;;  %s614_s3 = smov 72   ;;  %v555_v6 = vld [vmem:[%s942_s0 + $0x7] sm:$0x1]  }
  0x13   :  { %v222_v62 = vsel %vm35_vm2, %v548_v60, %v217_v59  ;;  %v551_v63 = vld [vmem:[%s942_s0 + $0x78] ss:$-48 sm:%s240_s13]   ;;  %v556_v7 = vld [vmem:[%s942_s0 + $0x77] ss:$-48 sm:%s271_s25]   ;;  %s302_s8 = smov 6  ;;  %s307_s9 = smov 24 }
  0x14   :  { %v226_v1 = vsel %vm39_vm3, %v549_v57, %v222_v62  ;;  %v243_v2 = vsel %vm25_vm0, %v551_v63, %v550_v61  ;;  %v552_v3 = vld [vmem:[%s942_s0 + $0xe8] ss:$-48 sm:%s245_s14]   ;;  %v274_v9 = vsel %vm25_vm0, %v556_v7, %v555_v6  ;;  %v557_v10 = vld [vmem:[%s942_s0 + $0xe7] ss:$-48 sm:%s276_s26]   ;;  %s312_s14 = smov 96  ;;  %s615_s21 = smov 64  }
  0x15   :  { %v553_v4 = vld [vmem:[%s942_s0 + $0x158] ss:$-48 sm:%s250_s19]   ;;  %227 = vrot.lane.b32.xlu0 %v226_v1, %s614_s3  ;;  %v248_v5 = vsel %vm30_vm1, %v552_v3, %v243_v2  ;;  %v279_v13 = vsel %vm30_vm1, %v557_v10, %v274_v9  ;;  %v559_v14 = vld [vmem:[%s942_s0 + $0x70] sm:$0x80]   ;;  %s333_s26 = smov 6  ;;  %s338_s27 = smov 24 }
  0x16   :  { %v253_v8 = vsel %vm35_vm2, %v553_v4, %v248_v5  ;;  %v558_v11 = vld [vmem:[%s942_s0 + $0x157] ss:$-48 sm:%s281_s2]   ;;  %v560_v15 = vld [vmem:[%s942_s0 + $0x6] sm:$0x1]   ;;  %v564_v20 = vld [vmem:[%s942_s0 + $0x6f] sm:$0x80]  }
  0x17   :  { %v257_v12 = vsel %vm39_vm3, %v554_v0, %v253_v8  ;;  %v561_v16 = vld [vmem:[%s942_s0 + $0x76] ss:$-48 sm:%s302_s8]   ;;  %v284_v17 = vsel %vm35_vm2, %v558_v11, %v279_v13  ;;  %v565_v24 = vld [vmem:[%s942_s0 + $0x5] sm:$0x1]   ;;  %s343_s3 = smov 96  ;;  %s616_s4 = smov 56  }
  0x18   :  { %258 = vrot.lane.b32.xlu1 %v257_v12, %s615_s21  ;;  %v305_v18 = vsel %vm25_vm0, %v561_v16, %v560_v15  ;;  %v562_v19 = vld [vmem:[%s942_s0 + $0xe6] ss:$-48 sm:%s307_s9]   ;;  %v288_v21 = vsel %vm39_vm3, %v559_v14, %v284_v17  ;;  %v569_v27 = vld [vmem:[%s942_s0 + $0x6e] sm:$0x80]   ;;  %s364_s9 = smov 6  ;;  %s369_s10 = smov 24 }
  0x19   :  { %v310_v22 = vsel %vm30_vm1, %v562_v19, %v305_v18  ;;  %v563_v23 = vld [vmem:[%s942_s0 + $0x156] ss:$-48 sm:%s312_s14]   ;;  %289 = vrot.lane.b32.xlu0 %v288_v21, %s616_s4  ;;  %s374_s15 = smov 96  ;;  %s617_s16 = smov 48   ;;  %v570_v33 = vld [vmem:[%s942_s0 + $0x4] sm:$0x1]  }
  0x1a   :  { %v315_v25 = vsel %vm35_vm2, %v563_v23, %v310_v22  ;;  %v566_v26 = vld [vmem:[%s942_s0 + $0x75] ss:$-48 sm:%s333_s26]   ;;  %v571_v34 = vld [vmem:[%s942_s0 + $0x74] ss:$-48 sm:%s364_s9]   ;;  %s395_s21 = smov 6  ;;  %s400_s22 = smov 24 }
  0x1b   :  { %v319_v28 = vsel %vm39_vm3, %v564_v20, %v315_v25  ;;  %v336_v29 = vsel %vm25_vm0, %v566_v26, %v565_v24  ;;  %v567_v30 = vld [vmem:[%s942_s0 + $0xe5] ss:$-48 sm:%s338_s27]   ;;  %v367_v36 = vsel %vm25_vm0, %v571_v34, %v570_v33  ;;  %v572_v37 = vld [vmem:[%s942_s0 + $0xe4] ss:$-48 sm:%s369_s10]   ;;  %s405_s27 = smov 96  ;;  %s618_s5 = smov 40  }
  0x1c   :  { %v568_v31 = vld [vmem:[%s942_s0 + $0x155] ss:$-48 sm:%s343_s3]   ;;  %320 = vrot.lane.b32.xlu1 %v319_v28, %s617_s16  ;;  %v341_v32 = vsel %vm30_vm1, %v567_v30, %v336_v29  ;;  %v372_v40 = vsel %vm30_vm1, %v572_v37, %v367_v36  ;;  %v574_v41 = vld [vmem:[%s942_s0 + $0x6d] sm:$0x80]   ;;  %s426_s10 = smov 6  ;;  %s431_s11 = smov 24 }
  0x1d   :  { %v346_v35 = vsel %vm35_vm2, %v568_v31, %v341_v32  ;;  %v573_v38 = vld [vmem:[%s942_s0 + $0x154] ss:$-48 sm:%s374_s15]   ;;  %v575_v42 = vld [vmem:[%s942_s0 + $0x3] sm:$0x1]   ;;  %v579_v47 = vld [vmem:[%s942_s0 + $0x6c] sm:$0x80]  }
  0x1e   :  { %v350_v39 = vsel %vm39_vm3, %v569_v27, %v346_v35  ;;  %v576_v43 = vld [vmem:[%s942_s0 + $0x73] ss:$-48 sm:%s395_s21]   ;;  %v377_v44 = vsel %vm35_vm2, %v573_v38, %v372_v40  ;;  %v580_v51 = vld [vmem:[%s942_s0 + $0x2] sm:$0x1]   ;;  %s436_s16 = smov 96  ;;  %s619_s17 = smov 32  }
  0x1f   :  { %351 = vrot.lane.b32.xlu0 %v350_v39, %s618_s5  ;;  %v398_v45 = vsel %vm25_vm0, %v576_v43, %v575_v42  ;;  %v577_v46 = vld [vmem:[%s942_s0 + $0xe3] ss:$-48 sm:%s400_s22]   ;;  %v381_v48 = vsel %vm39_vm3, %v574_v41, %v377_v44  ;;  %v584_v54 = vld [vmem:[%s942_s0 + $0x6b] sm:$0x80]   ;;  %s457_s22 = smov 6  ;;  %s462_s23 = smov 24 }
  0x20   :  { %v403_v49 = vsel %vm30_vm1, %v577_v46, %v398_v45  ;;  %v578_v50 = vld [vmem:[%s942_s0 + $0x153] ss:$-48 sm:%s405_s27]   ;;  %382 = vrot.lane.b32.xlu1 %v381_v48, %s619_s17  ;;  %s467_s28 = smov 96  ;;  %s620_s29 = smov 24   ;;  %v585_v60 = vld [vmem:[%s942_s0 + $0x1] sm:$0x1]  }
  0x21   :  { %v408_v52 = vsel %vm35_vm2, %v578_v50, %v403_v49  ;;  %v581_v53 = vld [vmem:[%s942_s0 + $0x72] ss:$-48 sm:%s426_s10]   ;;  %v586_v61 = vld [vmem:[%s942_s0 + $0x71] ss:$-48 sm:%s457_s22]   ;;  %s2_s5 = smov 3  ;;  %s4_s10 = smov 12 }
  0x22   :  { %v412_v55 = vsel %vm39_vm3, %v579_v47, %v408_v52  ;;  %v429_v56 = vsel %vm25_vm0, %v581_v53, %v580_v51  ;;  %v582_v57 = vld [vmem:[%s942_s0 + $0xe2] ss:$-48 sm:%s431_s11]   ;;  %v460_v63 = vsel %vm25_vm0, %v586_v61, %v585_v60  ;;  %v587_v0 = vld [vmem:[%s942_s0 + $0xe1] ss:$-48 sm:%s462_s23]   ;;  %vm6_vm4 = vcmask 1043458   ;;  %s8_s15 = smov 48 }
  0x23   :  { %v583_v58 = vld [vmem:[%s942_s0 + $0x152] ss:$-48 sm:%s436_s16]   ;;  %413 = vrot.lane.b32.xlu0 %v412_v55, %s620_s29  ;;  %v434_v59 = vsel %vm30_vm1, %v582_v57, %v429_v56  ;;  %v465_v3 = vsel %vm30_vm1, %v587_v0, %v460_v63  ;;  %v589_v4 = vld [vmem:[%s942_s0 + $0x6a] sm:$0x80]   ;;  %vm10_vm5 = vcmask 1045508   ;;  %s621_s16 = smov 16  }
  0x24   :  { %v439_v62 = vsel %vm35_vm2, %v583_v58, %v434_v59  ;;  %v588_v1 = vld [vmem:[%s942_s0 + $0x151] ss:$-48 sm:%s467_s28]   ;;  %v3_v5 = vld [vmem:[%s942_s0] ss:$16 sm:%s2_s5]   ;;  %s12_s19 = smov 192  ;;  %vm14_vm6 = vcmask 1047558  }
  0x25   :  { %v443_v2 = vsel %vm39_vm3, %v584_v54, %v439_v62  ;;  %v470_v6 = vsel %vm35_vm2, %v588_v1, %v465_v3  ;;  %v5_v7 = vld [vmem:[%s942_s0] ss:$16 sm:%s4_s10]   ;;  %vm16_vm7 = vcmask 64512   ;;  %vm43_vm8 = vcmask 1048512  }
  0x26   :  { %444 = vrot.lane.b32.xlu1 %v443_v2, %s621_s16  ;;  %v474_v8 = vsel %vm39_vm3, %v589_v4, %v470_v6  ;;  %v7_v9 = vsel %vm6_vm4, %v5_v7, %v3_v5  ;;  %v9_v10 = vld [vmem:[%s942_s0] ss:$16 sm:%s8_s15]   ;;  %vm74_vm9 = vcmask 982912   ;;  %vm105_vm10 = vcmask 917312  }
  0x27   :  { %v13_v11 = vld [vmem:[%s942_s0] ss:$16 sm:%s12_s19]   ;;  %s622_s0 = smov 8   ;;  %v11_v12 = vsel %vm10_vm5, %v9_v10, %v7_v9  ;;  %vm136_vm11 = vcmask 851712   ;;  %vm167_vm12 = vcmask 786112   ;;  %vm198_vm13 = vcmask 720512  }
  0x28   :  { %475 = vrot.lane.b32.xlu0 %v474_v8, %s622_s0  ;;  %v15_v13 = vsel %vm14_vm6, %v13_v11, %v11_v12  ;;  %vm229_vm14 = vcmask 654912   ;;  %vm260_vm15 = vcmask 589312   ;;  %vm291_vm0 = vcmask 523712  }
  0x29   :  { %17 = vst.msk [vmem:[#allocation0] ss:$8 sm:$0xf] %vm16_vm7, %v15_v13   ;;  %19 = vst.msk [vmem:[#allocation0 - $0x1f] ss:$8 sm:$0xf0] %vm16_vm7, %v15_v13  }
  0x2a   :  { %vm322_vm1 = vcmask 458112   ;;  %vm353_vm2 = vcmask 392512   ;;  %vm384_vm3 = vcmask 326912   ;;  %vm415_vm4 = vcmask 261312  }
  0x2b   :  { %vm446_vm5 = vcmask 195712   ;;  %vm477_vm6 = vcmask 130112  }
  0x79   :  { %v42_v14 = vpop.permute.xlu0 %41  }
  0x7a   :  { %44 = vst.msk [vmem:[#allocation0] sm:$0x3] %vm43_vm8, %v42_v14   ;;  %46 = vst.msk [vmem:[#allocation0 + $0x6] sm:$0xc] %vm43_vm8, %v42_v14  }
  0x7b   :  { %48 = vst.msk [vmem:[#allocation0 + $0xc] sm:$0x30] %vm43_vm8, %v42_v14   ;;  %50 = vst.msk [vmem:[#allocation0 + $0x12] sm:$0xc0] %vm43_vm8, %v42_v14   ;;  %v104_v15 = vpop.permute.xlu1 %103  }
  0x7d   :  { %v73_v16 = vpop.permute.xlu0 %72  }
  0x7e   :  { %75 = vst.msk [vmem:[#allocation0] sm:$0x3] %vm74_vm9, %v73_v16   ;;  %77 = vst.msk [vmem:[#allocation0 + $0x6] sm:$0xc] %vm74_vm9, %v73_v16  }
  0x7f   :  { %79 = vst.msk [vmem:[#allocation0 + $0xc] sm:$0x30] %vm74_vm9, %v73_v16   ;;  %81 = vst.msk [vmem:[#allocation0 + $0x12] sm:$0xc0] %vm74_vm9, %v73_v16  }
  0x80   :  { %106 = vst.msk [vmem:[#allocation0] sm:$0x3] %vm105_vm10, %v104_v15   ;;  %108 = vst.msk [vmem:[#allocation0 + $0x6] sm:$0xc] %vm105_vm10, %v104_v15   ;;  %v135_v17 = vpop.permute.xlu1 %134  }
  0x81   :  { %110 = vst.msk [vmem:[#allocation0 + $0xc] sm:$0x30] %vm105_vm10, %v104_v15   ;;  %112 = vst.msk [vmem:[#allocation0 + $0x12] sm:$0xc0] %vm105_vm10, %v104_v15  }
  0x82   :  { %137 = vst.msk [vmem:[#allocation0] sm:$0x3] %vm136_vm11, %v135_v17   ;;  %139 = vst.msk [vmem:[#allocation0 + $0x6] sm:$0xc] %vm136_vm11, %v135_v17   ;;  %v166_v18 = vpop.permute.xlu0 %165  }
  0x83   :  { %141 = vst.msk [vmem:[#allocation0 + $0xc] sm:$0x30] %vm136_vm11, %v135_v17   ;;  %143 = vst.msk [vmem:[#allocation0 + $0x12] sm:$0xc0] %vm136_vm11, %v135_v17  }
  0x84   :  { %168 = vst.msk [vmem:[#allocation0] sm:$0x3] %vm167_vm12, %v166_v18   ;;  %170 = vst.msk [vmem:[#allocation0 + $0x6] sm:$0xc] %vm167_vm12, %v166_v18   ;;  %v197_v19 = vpop.permute.xlu1 %196  }
  0x85   :  { %172 = vst.msk [vmem:[#allocation0 + $0xc] sm:$0x30] %vm167_vm12, %v166_v18   ;;  %174 = vst.msk [vmem:[#allocation0 + $0x12] sm:$0xc0] %vm167_vm12, %v166_v18  }
  0x86   :  { %199 = vst.msk [vmem:[#allocation0] sm:$0x3] %vm198_vm13, %v197_v19   ;;  %201 = vst.msk [vmem:[#allocation0 + $0x6] sm:$0xc] %vm198_vm13, %v197_v19  }
  0x87   :  { %203 = vst.msk [vmem:[#allocation0 + $0xc] sm:$0x30] %vm198_vm13, %v197_v19   ;;  %205 = vst.msk [vmem:[#allocation0 + $0x12] sm:$0xc0] %vm198_vm13, %v197_v19   ;;  %v228_v20 = vpop.permute.xlu0 %227  }
  0x88   :  { %230 = vst.msk [vmem:[#allocation0] sm:$0x3] %vm229_vm14, %v228_v20   ;;  %232 = vst.msk [vmem:[#allocation0 + $0x6] sm:$0xc] %vm229_vm14, %v228_v20  }
  0x89   :  { %234 = vst.msk [vmem:[#allocation0 + $0xc] sm:$0x30] %vm229_vm14, %v228_v20   ;;  %236 = vst.msk [vmem:[#allocation0 + $0x12] sm:$0xc0] %vm229_vm14, %v228_v20  }
  0x8a   :  { %v259_v21 = vpop.permute.xlu1 %258  }
  0x8b   :  { %261 = vst.msk [vmem:[#allocation0] sm:$0x3] %vm260_vm15, %v259_v21   ;;  %263 = vst.msk [vmem:[#allocation0 + $0x6] sm:$0xc] %vm260_vm15, %v259_v21   ;;  %v290_v22 = vpop.permute.xlu0 %289  }
  0x8c   :  { %265 = vst.msk [vmem:[#allocation0 + $0xc] sm:$0x30] %vm260_vm15, %v259_v21   ;;  %267 = vst.msk [vmem:[#allocation0 + $0x12] sm:$0xc0] %vm260_vm15, %v259_v21  }
  0x8d   :  { %292 = vst.msk [vmem:[#allocation0] sm:$0x3] %vm291_vm0, %v290_v22   ;;  %294 = vst.msk [vmem:[#allocation0 + $0x6] sm:$0xc] %vm291_vm0, %v290_v22  }
  0x8e   :  { %296 = vst.msk [vmem:[#allocation0 + $0xc] sm:$0x30] %vm291_vm0, %v290_v22   ;;  %298 = vst.msk [vmem:[#allocation0 + $0x12] sm:$0xc0] %vm291_vm0, %v290_v22   ;;  %v321_v23 = vpop.permute.xlu1 %320  }
  0x8f   :  { %323 = vst.msk [vmem:[#allocation0] sm:$0x3] %vm322_vm1, %v321_v23   ;;  %325 = vst.msk [vmem:[#allocation0 + $0x6] sm:$0xc] %vm322_vm1, %v321_v23  }
  0x90   :  { %327 = vst.msk [vmem:[#allocation0 + $0xc] sm:$0x30] %vm322_vm1, %v321_v23   ;;  %329 = vst.msk [vmem:[#allocation0 + $0x12] sm:$0xc0] %vm322_vm1, %v321_v23  }
  0x91   :  { %v352_v24 = vpop.permute.xlu0 %351  }
  0x92   :  { %354 = vst.msk [vmem:[#allocation0] sm:$0x3] %vm353_vm2, %v352_v24   ;;  %356 = vst.msk [vmem:[#allocation0 + $0x6] sm:$0xc] %vm353_vm2, %v352_v24   ;;  %v383_v25 = vpop.permute.xlu1 %382  }
  0x93   :  { %358 = vst.msk [vmem:[#allocation0 + $0xc] sm:$0x30] %vm353_vm2, %v352_v24   ;;  %360 = vst.msk [vmem:[#allocation0 + $0x12] sm:$0xc0] %vm353_vm2, %v352_v24  }
  0x94   :  { %385 = vst.msk [vmem:[#allocation0] sm:$0x3] %vm384_vm3, %v383_v25   ;;  %387 = vst.msk [vmem:[#allocation0 + $0x6] sm:$0xc] %vm384_vm3, %v383_v25  }
  0x95   :  { %389 = vst.msk [vmem:[#allocation0 + $0xc] sm:$0x30] %vm384_vm3, %v383_v25   ;;  %391 = vst.msk [vmem:[#allocation0 + $0x12] sm:$0xc0] %vm384_vm3, %v383_v25   ;;  %v414_v26 = vpop.permute.xlu0 %413  }
  0x96   :  { %416 = vst.msk [vmem:[#allocation0] sm:$0x3] %vm415_vm4, %v414_v26   ;;  %418 = vst.msk [vmem:[#allocation0 + $0x6] sm:$0xc] %vm415_vm4, %v414_v26  }
  0x97   :  { %420 = vst.msk [vmem:[#allocation0 + $0xc] sm:$0x30] %vm415_vm4, %v414_v26   ;;  %422 = vst.msk [vmem:[#allocation0 + $0x12] sm:$0xc0] %vm415_vm4, %v414_v26  }
  0x98   :  { %v445_v27 = vpop.permute.xlu1 %444  }
  0x99   :  { %447 = vst.msk [vmem:[#allocation0] sm:$0x3] %vm446_vm5, %v445_v27   ;;  %449 = vst.msk [vmem:[#allocation0 + $0x6] sm:$0xc] %vm446_vm5, %v445_v27  }
  0x9a   :  { %451 = vst.msk [vmem:[#allocation0 + $0xc] sm:$0x30] %vm446_vm5, %v445_v27   ;;  %453 = vst.msk [vmem:[#allocation0 + $0x12] sm:$0xc0] %vm446_vm5, %v445_v27   ;;  %v476_v28 = vpop.permute.xlu0 %475  }
  0x9b   :  { %478 = vst.msk [vmem:[#allocation0] sm:$0x3] %vm477_vm6, %v476_v28   ;;  %480 = vst.msk [vmem:[#allocation0 + $0x6] sm:$0xc] %vm477_vm6, %v476_v28  }
  0x9c   :  { %482 = vst.msk [vmem:[#allocation0 + $0xc] sm:$0x30] %vm477_vm6, %v476_v28   ;;  %484 = vst.msk [vmem:[#allocation0 + $0x12] sm:$0xc0] %vm477_vm6, %v476_v28  }
  0xa2   :  { %v489_v29 = vld [vmem:[#allocation0] sm:$0x3]  ;;  %v494_v30 = vld [vmem:[#allocation0 + $0x8] sm:$0x3] }
  0xa3   :  { %v500_v31 = vld [vmem:[#allocation0 + $0x10] sm:$0x3]  ;;  %492 = vst [vmem:[%s943_s1] sm:$0x3] %v489_v29  ;;  %590 = vst [vmem:[%s943_s1 + $0x2] sm:$0x3] %v494_v30 }
  0xa4   :  { %591 = vst [vmem:[%s943_s1 + $0x4] sm:$0x3] %v500_v31  ;;  %v507_v32 = vld [vmem:[#allocation0 + $0x18] sm:$0x3] }
  0xa5   :  { %592 = vst [vmem:[%s943_s1 + $0x6] sm:$0x3] %v507_v32 }

// kernel: tile.47
= control target key start
LH: loop header
LB: loop body
LE: loop exit
PB: predicated region body
PF: predicated region fallthrough
CT: control target
= control target key end

     0   :  { %vm5_vm0 = vcmask 1041409   ;;  %vm21_vm1 = vcmask 15360   ;;  %vm25_vm2 = vcmask 31744   ;;  %s921_s24 = smov 126   ;;  %s922_s25 = smov 122   ;;  %vm7_vm3 = vcmask 48128   ;;  %s1469_s0 = inlined_call_operand.vmem [shape: f32[2,64,6], index: 0, kind: input, shape index: {}]   ;;  %s1470_s1 = inlined_call_operand.vmem [shape: f32[2,384], index: 1, kind: output, shape index: {}]  }
   0x1   :  { %v726_v0 = vld [vmem:[%s1469_s0 + $0x15] sm:$0x1]   ;;  %v734_v6 = vld [vmem:[%s1469_s0 + $0x3f] sm:$0x1]   ;;  %v730_v10 = vld [vmem:[%s1469_s0 + $0x2a] sm:$0x1]  }
   0x2   :  { %v727_v1 = vld [vmem:[%s1469_s0 + $0x54] sm:$0x2]   ;;  %v735_v7 = vld [vmem:[%s1469_s0 + $0x7e] sm:$0x2]   ;;  %v731_v11 = vld [vmem:[%s1469_s0 + $0x69] sm:$0x2]  }
   0x3   :  { %v14_v2 = vsel %vm5_vm0, %v727_v1, %v726_v0  ;;  %v728_v3 = vld [vmem:[%s1469_s0 + $0x15] sm:$0x1]   ;;  %v57_v9 = vsel %vm5_vm0, %v735_v7, %v734_v6  ;;  %v732_v12 = vld [vmem:[%s1469_s0 + $0x2a] sm:$0x1]   ;;  %v35_v13 = vsel %vm5_vm0, %v731_v11, %v730_v10  ;;  %v736_v15 = vld [vmem:[%s1469_s0 + $0x14] sm:$0x1]  }
   0x4   :  { %v729_v4 = vld [vmem:[%s1469_s0 + $0x54] sm:$0x2]   ;;  %58 = vrot.lane.b32.xlu1 %v57_v9, %s922_s25  ;;  %v733_v14 = vld [vmem:[%s1469_s0 + $0x69] sm:$0x2]   ;;  %v737_v17 = vld [vmem:[%s1469_s0 + $0x53] sm:$0x2]  }
   0x5   :  { %v20_v5 = vsel %vm5_vm0, %v729_v4, %v728_v3  ;;  %v41_v16 = vsel %vm5_vm0, %v733_v14, %v732_v12  ;;  %v738_v18 = vld [vmem:[%s1469_s0 + $0x29] sm:$0x1]   ;;  %v68_v20 = vsel %vm5_vm0, %v737_v17, %v736_v15  ;;  %v740_v22 = vld [vmem:[%s1469_s0 + $0x3e] sm:$0x1]   ;;  %s923_s11 = smov 124   ;;  %s924_s12 = smov 120  }
   0x6   :  { %v22_v8 = vsel %vm21_vm1, %v20_v5, %v14_v2  ;;  %v43_v19 = vsel %vm25_vm2, %v41_v16, %v35_v13  ;;  %v739_v21 = vld [vmem:[%s1469_s0 + $0x68] sm:$0x2]   ;;  %v741_v23 = vld [vmem:[%s1469_s0 + $0x7d] sm:$0x2]   ;;  %v742_v26 = vld [vmem:[%s1469_s0 + $0x13] sm:$0x1]  }
   0x7   :  { %23 = vrot.lane.b32.xlu0 %v22_v8, %s921_s24  ;;  %v78_v24 = vsel %vm5_vm0, %v739_v21, %v738_v18  ;;  %v89_v25 = vsel %vm5_vm0, %v741_v23, %v740_v22  ;;  %v743_v27 = vld [vmem:[%s1469_s0 + $0x52] sm:$0x2]   ;;  %v744_v28 = vld [vmem:[%s1469_s0 + $0x28] sm:$0x1]   ;;  %s925_s21 = smov 118   ;;  %s926_s22 = smov 116  }
   0x8   :  { %69 = vrot.lane.b32.xlu1 %v68_v20, %s924_s12  ;;  %v745_v29 = vld [vmem:[%s1469_s0 + $0x67] sm:$0x2]   ;;  %v100_v30 = vsel %vm5_vm0, %v743_v27, %v742_v26  ;;  %v746_v32 = vld [vmem:[%s1469_s0 + $0x3d] sm:$0x1]   ;;  %v748_v34 = vld [vmem:[%s1469_s0 + $0x12] sm:$0x1]  }
   0x9   :  { %v110_v31 = vsel %vm5_vm0, %v745_v29, %v744_v28  ;;  %v747_v33 = vld [vmem:[%s1469_s0 + $0x7c] sm:$0x2]   ;;  %v749_v35 = vld [vmem:[%s1469_s0 + $0x51] sm:$0x2]   ;;  %s927_s2 = smov 114   ;;  %s928_s3 = smov 112  }
   0xa   :  { %v121_v36 = vsel %vm5_vm0, %v747_v33, %v746_v32  ;;  %v132_v37 = vsel %vm5_vm0, %v749_v35, %v748_v34  ;;  %v750_v38 = vld [vmem:[%s1469_s0 + $0x27] sm:$0x1]   ;;  %v752_v40 = vld [vmem:[%s1469_s0 + $0x3c] sm:$0x1]   ;;  %s929_s12 = smov 110   ;;  %s930_s13 = smov 108  }
   0xb   :  { %44 = vrot.lane.b32.xlu0 %v43_v19, %s923_s11  ;;  %v751_v39 = vld [vmem:[%s1469_s0 + $0x66] sm:$0x2]   ;;  %v753_v41 = vld [vmem:[%s1469_s0 + $0x7b] sm:$0x2]   ;;  %v754_v44 = vld [vmem:[%s1469_s0 + $0x11] sm:$0x1]  }
   0xc   :  { %90 = vrot.lane.b32.xlu1 %v89_v25, %s926_s22  ;;  %v142_v42 = vsel %vm5_vm0, %v751_v39, %v750_v38  ;;  %v153_v43 = vsel %vm5_vm0, %v753_v41, %v752_v40  ;;  %v755_v45 = vld [vmem:[%s1469_s0 + $0x50] sm:$0x2]   ;;  %v756_v46 = vld [vmem:[%s1469_s0 + $0x26] sm:$0x1]   ;;  %s931_s22 = smov 106   ;;  %s932_s23 = smov 104  }
   0xd   :  { %v757_v47 = vld [vmem:[%s1469_s0 + $0x65] sm:$0x2]   ;;  %v164_v48 = vsel %vm5_vm0, %v755_v45, %v754_v44  ;;  %v758_v50 = vld [vmem:[%s1469_s0 + $0x3b] sm:$0x1]   ;;  %v760_v52 = vld [vmem:[%s1469_s0 + $0x10] sm:$0x1]  }
   0xe   :  { %v174_v49 = vsel %vm5_vm0, %v757_v47, %v756_v46  ;;  %v759_v51 = vld [vmem:[%s1469_s0 + $0x7a] sm:$0x2]   ;;  %v761_v53 = vld [vmem:[%s1469_s0 + $0x4f] sm:$0x2]   ;;  %s934_s4 = smov 100   ;;  %s936_s14 = smov 96  }
   0xf   :  { %79 = vrot.lane.b32.xlu0 %v78_v24, %s925_s21  ;;  %v185_v54 = vsel %vm5_vm0, %v759_v51, %v758_v50  ;;  %v196_v55 = vsel %vm5_vm0, %v761_v53, %v760_v52  ;;  %v762_v56 = vld [vmem:[%s1469_s0 + $0x25] sm:$0x1]   ;;  %v764_v58 = vld [vmem:[%s1469_s0 + $0x3a] sm:$0x1]   ;;  %v766_v62 = vld [vmem:[%s1469_s0 + $0xf] sm:$0x1]  }
  0x10   :  { %111 = vrot.lane.b32.xlu1 %v110_v31, %s928_s3  ;;  %s933_s3 = smov 102   ;;  %v763_v57 = vld [vmem:[%s1469_s0 + $0x64] sm:$0x2]   ;;  %v765_v59 = vld [vmem:[%s1469_s0 + $0x79] sm:$0x2]   ;;  %s938_s24 = smov 92  }
  0x11   :  { %v206_v60 = vsel %vm5_vm0, %v763_v57, %v762_v56  ;;  %v217_v61 = vsel %vm5_vm0, %v765_v59, %v764_v58  ;;  %v767_v63 = vld [vmem:[%s1469_s0 + $0x4e] sm:$0x2]   ;;  %v768_v0 = vld [vmem:[%s1469_s0 + $0x24] sm:$0x1]   ;;  %v770_v4 = vld [vmem:[%s1469_s0 + $0x39] sm:$0x1]  }
  0x12   :  { %v769_v1 = vld [vmem:[%s1469_s0 + $0x63] sm:$0x2]   ;;  %v228_v2 = vsel %vm5_vm0, %v767_v63, %v766_v62  ;;  %v771_v5 = vld [vmem:[%s1469_s0 + $0x78] sm:$0x2]   ;;  %v772_v6 = vld [vmem:[%s1469_s0 + $0xe] sm:$0x1]  }
  0x13   :  { %101 = vrot.lane.b32.xlu0 %v100_v30, %s927_s2  ;;  %v238_v3 = vsel %vm5_vm0, %v769_v1, %v768_v0  ;;  %v773_v7 = vld [vmem:[%s1469_s0 + $0x4d] sm:$0x2]   ;;  %s940_s5 = smov 88   ;;  %v249_v8 = vsel %vm5_vm0, %v771_v5, %v770_v4  ;;  %v774_v10 = vld [vmem:[%s1469_s0 + $0x23] sm:$0x1]   ;;  %s942_s15 = smov 84  }
  0x14   :  { %133 = vrot.lane.b32.xlu1 %v132_v37, %s930_s13  ;;  %s935_s13 = smov 98   ;;  %v260_v9 = vsel %vm5_vm0, %v773_v7, %v772_v6  ;;  %v775_v11 = vld [vmem:[%s1469_s0 + $0x62] sm:$0x2]   ;;  %v776_v12 = vld [vmem:[%s1469_s0 + $0x38] sm:$0x1]   ;;  %s944_s25 = smov 80  }
  0x15   :  { %v777_v13 = vld [vmem:[%s1469_s0 + $0x77] sm:$0x2]   ;;  %v270_v14 = vsel %vm5_vm0, %v775_v11, %v774_v10  ;;  %v778_v16 = vld [vmem:[%s1469_s0 + $0xd] sm:$0x1]   ;;  %v780_v18 = vld [vmem:[%s1469_s0 + $0x22] sm:$0x1]  }
  0x16   :  { %v281_v15 = vsel %vm5_vm0, %v777_v13, %v776_v12  ;;  %v779_v17 = vld [vmem:[%s1469_s0 + $0x4c] sm:$0x2]   ;;  %v781_v19 = vld [vmem:[%s1469_s0 + $0x61] sm:$0x2]   ;;  %v782_v20 = vld [vmem:[%s1469_s0 + $0x37] sm:$0x1]  }
  0x17   :  { %122 = vrot.lane.b32.xlu0 %v121_v36, %s929_s12  ;;  %v292_v21 = vsel %vm5_vm0, %v779_v17, %v778_v16  ;;  %v302_v22 = vsel %vm5_vm0, %v781_v19, %v780_v18  ;;  %v783_v23 = vld [vmem:[%s1469_s0 + $0x76] sm:$0x2]   ;;  %v2_v24 = vld [vmem:[%s1469_s0] sm:$0x1]   ;;  %v784_v25 = vld [vmem:[%s1469_s0 + $0xc] sm:$0x1]  }
  0x18   :  { %154 = vrot.lane.b32.xlu1 %v153_v43, %s932_s23  ;;  %s937_s23 = smov 94   ;;  %v785_v26 = vld [vmem:[%s1469_s0 + $0x4b] sm:$0x2]   ;;  %v725_v27 = vld [vmem:[%s1469_s0 + $0x3f] sm:$0x2]   ;;  %s945_s9 = smov 78   ;;  %v313_v29 = vsel %vm5_vm0, %v783_v23, %v782_v20 }
  0x19   :  { %v6_v28 = vsel %vm5_vm0, %v725_v27, %v2_v24  ;;  %s946_s10 = smov 76   ;;  %v324_v30 = vsel %vm5_vm0, %v785_v26, %v784_v25  ;;  %v786_v31 = vld [vmem:[%s1469_s0 + $0x21] sm:$0x1]   ;;  %v788_v33 = vld [vmem:[%s1469_s0 + $0x36] sm:$0x1]   ;;  %s947_s19 = smov 74  }
  0x1a   :  { %8 = vst.msk [vmem:[#allocation0] sm:$0x3] %vm7_vm3, %v6_v28   ;;  %v787_v32 = vld [vmem:[%s1469_s0 + $0x60] sm:$0x2]   ;;  %v789_v34 = vld [vmem:[%s1469_s0 + $0x75] sm:$0x2]  }
  0x1b   :  { %143 = vrot.lane.b32.xlu0 %v142_v42, %s931_s22  ;;  %s948_s20 = smov 72   ;;  %v334_v35 = vsel %vm5_vm0, %v787_v32, %v786_v31  ;;  %v345_v36 = vsel %vm5_vm0, %v789_v34, %v788_v33  ;;  %v790_v37 = vld [vmem:[%s1469_s0 + $0xb] sm:$0x1]   ;;  %v792_v39 = vld [vmem:[%s1469_s0 + $0x20] sm:$0x1]   ;;  %s949_s29 = smov 70  }
  0x1c   :  { %175 = vrot.lane.b32.xlu1 %v174_v49, %s934_s4  ;;  %s939_s4 = smov 90   ;;  %v791_v38 = vld [vmem:[%s1469_s0 + $0x4a] sm:$0x2]   ;;  %v793_v40 = vld [vmem:[%s1469_s0 + $0x5f] sm:$0x2]   ;;  %s950_s30 = smov 68  }
  0x1d   :  { %v356_v41 = vsel %vm5_vm0, %v791_v38, %v790_v37  ;;  %v366_v42 = vsel %vm5_vm0, %v793_v40, %v792_v39  ;;  %v794_v43 = vld [vmem:[%s1469_s0 + $0x35] sm:$0x1]   ;;  %v796_v45 = vld [vmem:[%s1469_s0 + $0xa] sm:$0x1]   ;;  %s952_s11 = smov 64   ;;  %s954_s21 = smov 60  }
  0x1e   :  { %v795_v44 = vld [vmem:[%s1469_s0 + $0x74] sm:$0x2]   ;;  %v797_v46 = vld [vmem:[%s1469_s0 + $0x49] sm:$0x2]   ;;  %v798_v49 = vld [vmem:[%s1469_s0 + $0x1f] sm:$0x1]  }
  0x1f   :  { %165 = vrot.lane.b32.xlu0 %v164_v48, %s933_s3  ;;  %v377_v47 = vsel %vm5_vm0, %v795_v44, %v794_v43  ;;  %v388_v48 = vsel %vm5_vm0, %v797_v46, %v796_v45  ;;  %v799_v50 = vld [vmem:[%s1469_s0 + $0x5e] sm:$0x2]   ;;  %v800_v51 = vld [vmem:[%s1469_s0 + $0x34] sm:$0x1]   ;;  %v803_v56 = vld [vmem:[%s1469_s0 + $0x48] sm:$0x2]  }
  0x20   :  { %197 = vrot.lane.b32.xlu1 %v196_v55, %s936_s14  ;;  %s941_s14 = smov 86   ;;  %v801_v52 = vld [vmem:[%s1469_s0 + $0x73] sm:$0x2]   ;;  %v398_v53 = vsel %vm5_vm0, %v799_v50, %v798_v49  ;;  %v802_v55 = vld [vmem:[%s1469_s0 + $0x9] sm:$0x1]   ;;  %s956_s2 = smov 56  }
  0x21   :  { %v804_v57 = vld [vmem:[%s1469_s0 + $0x1e] sm:$0x1]   ;;  %v420_v59 = vsel %vm5_vm0, %v803_v56, %v802_v55  ;;  %v807_v62 = vld [vmem:[%s1469_s0 + $0x72] sm:$0x2]   ;;  %v808_v63 = vld [vmem:[%s1469_s0 + $0x8] sm:$0x1]  }
  0x22   :  { %v805_v58 = vld [vmem:[%s1469_s0 + $0x5d] sm:$0x2]   ;;  %v809_v0 = vld [vmem:[%s1469_s0 + $0x47] sm:$0x2]   ;;  %s958_s12 = smov 52   ;;  %s960_s22 = smov 48  }
  0x23   :  { %186 = vrot.lane.b32.xlu0 %v185_v54, %s935_s13  ;;  %v409_v54 = vsel %vm5_vm0, %v801_v52, %v800_v51  ;;  %v811_v4 = vld [vmem:[%s1469_s0 + $0x5c] sm:$0x2]   ;;  %v812_v5 = vld [vmem:[%s1469_s0 + $0x32] sm:$0x1]   ;;  %v815_v10 = vld [vmem:[%s1469_s0 + $0x46] sm:$0x2]  }
  0x24   :  { %218 = vrot.lane.b32.xlu1 %v217_v61, %s938_s24  ;;  %s943_s24 = smov 82   ;;  %v806_v61 = vld [vmem:[%s1469_s0 + $0x33] sm:$0x1]   ;;  %v813_v6 = vld [vmem:[%s1469_s0 + $0x71] sm:$0x2]   ;;  %s962_s3 = smov 44  }
  0x25   :  { %v441_v1 = vsel %vm5_vm0, %v807_v62, %v806_v61  ;;  %v816_v11 = vld [vmem:[%s1469_s0 + $0x1c] sm:$0x1]   ;;  %v819_v16 = vld [vmem:[%s1469_s0 + $0x70] sm:$0x2]   ;;  %v820_v17 = vld [vmem:[%s1469_s0 + $0x6] sm:$0x1]  }
  0x26   :  { %v817_v12 = vld [vmem:[%s1469_s0 + $0x5b] sm:$0x2]   ;;  %v821_v18 = vld [vmem:[%s1469_s0 + $0x45] sm:$0x2]   ;;  %s964_s13 = smov 40   ;;  %vm28_vm4 = vcmask 1048560  }
  0x27   :  { %207 = vrot.lane.b32.xlu0 %v206_v60, %s937_s23  ;;  %v430_v60 = vsel %vm5_vm0, %v805_v58, %v804_v57  ;;  %v516_v20 = vsel %vm5_vm0, %v821_v18, %v820_v17  ;;  %v824_v23 = vld [vmem:[%s1469_s0 + $0x30] sm:$0x1]   ;;  %s966_s23 = smov 36   ;;  %v826_v27 = vld [vmem:[%s1469_s0 + $0x5] sm:$0x1]   ;;  %vm49_vm5 = vcmask 1048544  }
  0x28   :  { %239 = vrot.lane.b32.xlu1 %v238_v3, %s940_s5  ;;  %v810_v3 = vld [vmem:[%s1469_s0 + $0x1d] sm:$0x1]   ;;  %v825_v24 = vld [vmem:[%s1469_s0 + $0x6f] sm:$0x2]   ;;  %v827_v28 = vld [vmem:[%s1469_s0 + $0x44] sm:$0x2]  }
  0x29   :  { %v462_v7 = vsel %vm5_vm0, %v811_v4, %v810_v3  ;;  %v537_v26 = vsel %vm5_vm0, %v825_v24, %v824_v23  ;;  %v548_v31 = vsel %vm5_vm0, %v827_v28, %v826_v27  ;;  %v830_v33 = vld [vmem:[%s1469_s0 + $0x2f] sm:$0x1]   ;;  %v834_v39 = vld [vmem:[%s1469_s0 + $0x19] sm:$0x1]   ;;  %v838_v45 = vld [vmem:[%s1469_s0 + $0x3] sm:$0x1]  }
  0x2a   :  { %v831_v34 = vld [vmem:[%s1469_s0 + $0x6e] sm:$0x2]   ;;  %v835_v40 = vld [vmem:[%s1469_s0 + $0x58] sm:$0x2]   ;;  %v839_v46 = vld [vmem:[%s1469_s0 + $0x42] sm:$0x2]  }
  0x2b   :  { %229 = vrot.lane.b32.xlu0 %v228_v2, %s939_s4  ;;  %v452_v2 = vsel %vm5_vm0, %v809_v0, %v808_v63  ;;  %s968_s4 = smov 32   ;;  %v569_v37 = vsel %vm5_vm0, %v831_v34, %v830_v33  ;;  %v590_v43 = vsel %vm5_vm0, %v835_v40, %v834_v39  ;;  %s974_s5 = smov 20   ;;  %v612_v49 = vsel %vm5_vm0, %v839_v46, %v838_v45  ;;  %v842_v51 = vld [vmem:[%s1469_s0 + $0x2d] sm:$0x1]   ;;  %v846_v57 = vld [vmem:[%s1469_s0 + $0x17] sm:$0x1]  }
  0x2c   :  { %261 = vrot.lane.b32.xlu1 %v260_v9, %s942_s15  ;;  %v814_v9 = vld [vmem:[%s1469_s0 + $0x7] sm:$0x1]   ;;  %v843_v52 = vld [vmem:[%s1469_s0 + $0x6c] sm:$0x2]   ;;  %s976_s15 = smov 16   ;;  %s980_s6 = smov 8  }
  0x2d   :  { %v484_v13 = vsel %vm5_vm0, %v815_v10, %v814_v9  ;;  %v633_v55 = vsel %vm5_vm0, %v843_v52, %v842_v51  ;;  %v847_v58 = vld [vmem:[%s1469_s0 + $0x56] sm:$0x2]   ;;  %v850_v63 = vld [vmem:[%s1469_s0 + $0x1] sm:$0x1]   ;;  %v852_v3 = vld [vmem:[%s1469_s0 + $0x16] sm:$0x1]  }
  0x2e   :  { %v654_v61 = vsel %vm5_vm0, %v847_v58, %v846_v57  ;;  %v853_v4 = vld [vmem:[%s1469_s0 + $0x55] sm:$0x2]   ;;  %vm71_vm6 = vcmask 1032128   ;;  %vm60_vm7 = vcmask 1048528   ;;  %v854_v9 = vld [vmem:[%s1469_s0 + $0x2b] sm:$0x1]  }
  0x2f   :  { %250 = vrot.lane.b32.xlu0 %v249_v8, %s941_s14  ;;  %v473_v8 = vsel %vm5_vm0, %v813_v6, %v812_v5  ;;  %s970_s14 = smov 28   ;;  %v686_v6 = vsel %vm5_vm0, %v853_v4, %v852_v3  ;;  %v855_v10 = vld [vmem:[%s1469_s0 + $0x6a] sm:$0x2]   ;;  %vm81_vm8 = vcmask 1015728   ;;  %vm92_vm9 = vcmask 999328  }
  0x30   :  { %282 = vrot.lane.b32.xlu1 %v281_v15, %s944_s25  ;;  %v818_v15 = vld [vmem:[%s1469_s0 + $0x31] sm:$0x1]   ;;  %s978_s25 = smov 12   ;;  %vm103_vm10 = vcmask 982928   ;;  %vm113_vm11 = vcmask 966528   ;;  %vm124_vm12 = vcmask 950128  }
  0x31   :  { %v505_v19 = vsel %vm5_vm0, %v819_v16, %v818_v15  ;;  %vm135_vm13 = vcmask 933728   ;;  %vm145_vm14 = vcmask 917328   ;;  %vm156_vm15 = vcmask 900928  }
  0x32   :  { %vm199_vm3 = vcmask 835328  }
  0x33   :  { %271 = vrot.lane.b32.xlu0 %v270_v14, %s943_s24  ;;  %v494_v14 = vsel %vm5_vm0, %v817_v12, %v816_v11  ;;  %s972_s24 = smov 24   ;;  %v697_v11 = vsel %vm5_vm0, %v855_v10, %v854_v9 }
  0x34   :  { %303 = vrot.lane.b32.xlu1 %v302_v22, %s946_s10  ;;  %s951_s10 = smov 66   ;;  %v823_v22 = vld [vmem:[%s1469_s0 + $0x5a] sm:$0x2]  }
  0x37   :  { %293 = vrot.lane.b32.xlu0 %v292_v21, %s945_s9  ;;  %v822_v21 = vld [vmem:[%s1469_s0 + $0x1b] sm:$0x1]  }
  0x38   :  { %325 = vrot.lane.b32.xlu1 %v324_v30, %s948_s20  ;;  %s953_s20 = smov 62   ;;  %v526_v25 = vsel %vm5_vm0, %v823_v22, %v822_v21  ;;  %v829_v30 = vld [vmem:[%s1469_s0 + $0x59] sm:$0x2]  }
  0x3b   :  { %314 = vrot.lane.b32.xlu0 %v313_v29, %s947_s19  ;;  %v828_v29 = vld [vmem:[%s1469_s0 + $0x1a] sm:$0x1]  }
  0x3c   :  { %346 = vrot.lane.b32.xlu1 %v345_v36, %s950_s30  ;;  %s955_s30 = smov 58   ;;  %v558_v32 = vsel %vm5_vm0, %v829_v30, %v828_v29  ;;  %v833_v36 = vld [vmem:[%s1469_s0 + $0x43] sm:$0x2]  }
  0x3f   :  { %335 = vrot.lane.b32.xlu0 %v334_v35, %s949_s29  ;;  %v832_v35 = vld [vmem:[%s1469_s0 + $0x4] sm:$0x1]  }
  0x40   :  { %367 = vrot.lane.b32.xlu1 %v366_v42, %s952_s11  ;;  %s957_s11 = smov 54   ;;  %v580_v38 = vsel %vm5_vm0, %v833_v36, %v832_v35  ;;  %v837_v42 = vld [vmem:[%s1469_s0 + $0x6d] sm:$0x2]  }
  0x43   :  { %357 = vrot.lane.b32.xlu0 %v356_v41, %s951_s10  ;;  %v836_v41 = vld [vmem:[%s1469_s0 + $0x2e] sm:$0x1]  }
  0x44   :  { %389 = vrot.lane.b32.xlu1 %v388_v48, %s954_s21  ;;  %s959_s21 = smov 50   ;;  %v601_v44 = vsel %vm5_vm0, %v837_v42, %v836_v41  ;;  %v841_v48 = vld [vmem:[%s1469_s0 + $0x57] sm:$0x2]  }
  0x47   :  { %378 = vrot.lane.b32.xlu0 %v377_v47, %s953_s20  ;;  %v840_v47 = vld [vmem:[%s1469_s0 + $0x18] sm:$0x1]  }
  0x48   :  { %410 = vrot.lane.b32.xlu1 %v409_v54, %s956_s2  ;;  %s961_s2 = smov 46   ;;  %v622_v50 = vsel %vm5_vm0, %v841_v48, %v840_v47  ;;  %v845_v54 = vld [vmem:[%s1469_s0 + $0x41] sm:$0x2]  }
  0x4b   :  { %399 = vrot.lane.b32.xlu0 %v398_v53, %s955_s30  ;;  %v844_v53 = vld [vmem:[%s1469_s0 + $0x2] sm:$0x1]  }
  0x4c   :  { %431 = vrot.lane.b32.xlu1 %v430_v60, %s958_s12  ;;  %s963_s12 = smov 42   ;;  %v644_v56 = vsel %vm5_vm0, %v845_v54, %v844_v53  ;;  %v849_v60 = vld [vmem:[%s1469_s0 + $0x6b] sm:$0x2]  }
  0x4f   :  { %421 = vrot.lane.b32.xlu0 %v420_v59, %s957_s11  ;;  %v848_v59 = vld [vmem:[%s1469_s0 + $0x2c] sm:$0x1]   ;;  %s982_s11 = smov 4  }
  0x50   :  { %453 = vrot.lane.b32.xlu1 %v452_v2, %s960_s22  ;;  %s965_s22 = smov 38   ;;  %v665_v62 = vsel %vm5_vm0, %v849_v60, %v848_v59  ;;  %v851_v2 = vld [vmem:[%s1469_s0 + $0x40] sm:$0x2]   ;;  %s981_s0 = smov 6  }
  0x51   :  { %v676_v5 = vsel %vm5_vm0, %v851_v2, %v850_v63  ;;  %vm167_vm0 = vcmask 884528  }
  0x53   :  { %442 = vrot.lane.b32.xlu0 %v441_v1, %s959_s21 }
  0x54   :  { %474 = vrot.lane.b32.xlu1 %v473_v8, %s962_s3  ;;  %s967_s3 = smov 34  }
  0x57   :  { %463 = vrot.lane.b32.xlu0 %v462_v7, %s961_s2 }
  0x58   :  { %495 = vrot.lane.b32.xlu1 %v494_v14, %s964_s13  ;;  %s969_s13 = smov 30  }
  0x5b   :  { %485 = vrot.lane.b32.xlu0 %v484_v13, %s963_s12  ;;  %s983_s12 = smov 2  }
  0x5c   :  { %517 = vrot.lane.b32.xlu1 %v516_v20, %s966_s23  ;;  %s971_s23 = smov 26  }
  0x5f   :  { %506 = vrot.lane.b32.xlu0 %v505_v19, %s965_s22 }
  0x60   :  { %538 = vrot.lane.b32.xlu1 %v537_v26, %s968_s4  ;;  %s973_s4 = smov 22  }
  0x63   :  { %527 = vrot.lane.b32.xlu0 %v526_v25, %s967_s3 }
  0x64   :  { %559 = vrot.lane.b32.xlu1 %v558_v32, %s970_s14  ;;  %s975_s14 = smov 18  }
  0x67   :  { %549 = vrot.lane.b32.xlu0 %v548_v31, %s969_s13 }
  0x68   :  { %581 = vrot.lane.b32.xlu1 %v580_v38, %s972_s24  ;;  %s977_s24 = smov 14  }
  0x6b   :  { %570 = vrot.lane.b32.xlu0 %v569_v37, %s971_s23 }
  0x6c   :  { %602 = vrot.lane.b32.xlu1 %v601_v44, %s974_s5  ;;  %s979_s5 = smov 10  }
  0x6f   :  { %591 = vrot.lane.b32.xlu0 %v590_v43, %s973_s4 }
  0x70   :  { %623 = vrot.lane.b32.xlu1 %v622_v50, %s976_s15 }
  0x73   :  { %613 = vrot.lane.b32.xlu0 %v612_v49, %s975_s14 }
  0x74   :  { %645 = vrot.lane.b32.xlu1 %v644_v56, %s978_s25 }
  0x76   :  { %v59_v1 = vpop.permute.xlu1 %58  }
  0x77   :  { %634 = vrot.lane.b32.xlu0 %v633_v55, %s977_s24 }
  0x78   :  { %666 = vrot.lane.b32.xlu1 %v665_v62, %s980_s6 }
  0x79   :  { %v24_v0 = vpop.permute.xlu0 %23  }
  0x7a   :  { %27 = vst.msk [vmem:[#allocation0 + $0x8] sm:$0x3] %vm25_vm2, %v24_v0   ;;  %v70_v8 = vpop.permute.xlu1 %69   ;;  %vm188_vm2 = vcmask 851728  }
  0x7b   :  { %29 = vst.msk [vmem:[#allocation0] sm:$0x3] %vm28_vm4, %v24_v0   ;;  %655 = vrot.lane.b32.xlu0 %v654_v61, %s979_s5  ;;  %vm209_vm4 = vcmask 818928  }
  0x7c   :  { %72 = vst.msk [vmem:[#allocation0] sm:$0x3] %vm71_vm6, %v70_v8   ;;  %687 = vrot.lane.b32.xlu1 %v686_v6, %s982_s11  ;;  %vm231_vm6 = vcmask 786128  }
  0x7d   :  { %v45_v7 = vpop.permute.xlu0 %44  }
  0x7e   :  { %48 = vst.msk [vmem:[#allocation0 + $0x10] sm:$0x3] %vm21_vm1, %v45_v7   ;;  %v91_v13 = vpop.permute.xlu1 %90   ;;  %vm177_vm1 = vcmask 868128  }
  0x7f   :  { %51 = vst.msk [vmem:[#allocation0 + $0x8] sm:$0x3] %vm49_vm5, %v45_v7   ;;  %677 = vrot.lane.b32.xlu0 %v676_v5, %s981_s0  ;;  %vm220_vm5 = vcmask 802528  }
  0x80   :  { %62 = vst.msk [vmem:[#allocation0 + $0x10] sm:$0x3] %vm60_vm7, %v59_v1   ;;  %vm241_vm7 = vcmask 769728  }
  0x81   :  { %v80_v12 = vpop.permute.xlu0 %79   ;;  %94 = vst.msk [vmem:[#allocation0 + $0x10] sm:$0x3] %vm92_vm9, %v91_v13   ;;  %vm263_vm9 = vcmask 736928  }
  0x82   :  { %83 = vst.msk [vmem:[#allocation0 + $0x8] sm:$0x3] %vm81_vm8, %v80_v12   ;;  %v112_v15 = vpop.permute.xlu1 %111   ;;  %vm252_vm8 = vcmask 753328  }
  0x83   :  { %698 = vrot.lane.b32.xlu0 %v697_v11, %s983_s12  ;;  %115 = vst.msk [vmem:[#allocation0 + $0x8] sm:$0x3] %vm113_vm11, %v112_v15   ;;  %vm284_vm11 = vcmask 704128  }
  0x85   :  { %v102_v14 = vpop.permute.xlu0 %101  }
  0x86   :  { %104 = vst.msk [vmem:[#allocation0] sm:$0x3] %vm103_vm10, %v102_v14   ;;  %v134_v17 = vpop.permute.xlu1 %133   ;;  %vm273_vm10 = vcmask 720528  }
  0x87   :  { %136 = vst.msk [vmem:[#allocation0] sm:$0x3] %vm135_vm13, %v134_v17   ;;  %vm305_vm13 = vcmask 671328  }
  0x89   :  { %v123_v16 = vpop.permute.xlu0 %122  }
  0x8a   :  { %126 = vst.msk [vmem:[#allocation0 + $0x10] sm:$0x3] %vm124_vm12, %v123_v16   ;;  %v155_v19 = vpop.permute.xlu1 %154   ;;  %vm295_vm12 = vcmask 687728  }
  0x8b   :  { %158 = vst.msk [vmem:[#allocation0 + $0x10] sm:$0x3] %vm156_vm15, %v155_v19   ;;  %vm327_vm15 = vcmask 638528  }
  0x8d   :  { %v144_v18 = vpop.permute.xlu0 %143  }
  0x8e   :  { %147 = vst.msk [vmem:[#allocation0 + $0x8] sm:$0x3] %vm145_vm14, %v144_v18   ;;  %v176_v21 = vpop.permute.xlu1 %175   ;;  %vm316_vm14 = vcmask 654928  }
  0x8f   :  { %179 = vst.msk [vmem:[#allocation0 + $0x8] sm:$0x3] %vm177_vm1, %v176_v21   ;;  %vm348_vm1 = vcmask 605728  }
  0x91   :  { %v166_v20 = vpop.permute.xlu0 %165  }
  0x92   :  { %168 = vst.msk [vmem:[#allocation0] sm:$0x3] %vm167_vm0, %v166_v20   ;;  %v198_v23 = vpop.permute.xlu1 %197   ;;  %vm337_vm0 = vcmask 622128  }
  0x93   :  { %200 = vst.msk [vmem:[#allocation0] sm:$0x3] %vm199_vm3, %v198_v23   ;;  %vm369_vm3 = vcmask 572928  }
  0x95   :  { %v187_v22 = vpop.permute.xlu0 %186  }
  0x96   :  { %190 = vst.msk [vmem:[#allocation0 + $0x10] sm:$0x3] %vm188_vm2, %v187_v22   ;;  %v219_v25 = vpop.permute.xlu1 %218   ;;  %vm359_vm2 = vcmask 589328  }
  0x97   :  { %222 = vst.msk [vmem:[#allocation0 + $0x10] sm:$0x3] %vm220_vm5, %v219_v25   ;;  %vm391_vm5 = vcmask 540128  }
  0x99   :  { %v208_v24 = vpop.permute.xlu0 %207  }
  0x9a   :  { %211 = vst.msk [vmem:[#allocation0 + $0x8] sm:$0x3] %vm209_vm4, %v208_v24   ;;  %v240_v27 = vpop.permute.xlu1 %239   ;;  %vm380_vm4 = vcmask 556528  }
  0x9b   :  { %243 = vst.msk [vmem:[#allocation0 + $0x8] sm:$0x3] %vm241_vm7, %v240_v27   ;;  %vm412_vm7 = vcmask 507328  }
  0x9d   :  { %v230_v26 = vpop.permute.xlu0 %229  }
  0x9e   :  { %232 = vst.msk [vmem:[#allocation0] sm:$0x3] %vm231_vm6, %v230_v26   ;;  %v262_v29 = vpop.permute.xlu1 %261   ;;  %vm401_vm6 = vcmask 523728  }
  0x9f   :  { %264 = vst.msk [vmem:[#allocation0] sm:$0x3] %vm263_vm9, %v262_v29   ;;  %vm433_vm9 = vcmask 474528  }
  0xa1   :  { %v251_v28 = vpop.permute.xlu0 %250  }
  0xa2   :  { %254 = vst.msk [vmem:[#allocation0 + $0x10] sm:$0x3] %vm252_vm8, %v251_v28   ;;  %v283_v31 = vpop.permute.xlu1 %282   ;;  %vm423_vm8 = vcmask 490928  }
  0xa3   :  { %286 = vst.msk [vmem:[#allocation0 + $0x10] sm:$0x3] %vm284_vm11, %v283_v31   ;;  %vm455_vm11 = vcmask 441728  }
  0xa5   :  { %v272_v30 = vpop.permute.xlu0 %271  }
  0xa6   :  { %275 = vst.msk [vmem:[#allocation0 + $0x8] sm:$0x3] %vm273_vm10, %v272_v30   ;;  %v304_v33 = vpop.permute.xlu1 %303   ;;  %vm444_vm10 = vcmask 458128  }
  0xa7   :  { %307 = vst.msk [vmem:[#allocation0 + $0x8] sm:$0x3] %vm305_vm13, %v304_v33   ;;  %vm476_vm13 = vcmask 408928  }
  0xa9   :  { %v294_v32 = vpop.permute.xlu0 %293  }
  0xaa   :  { %296 = vst.msk [vmem:[#allocation0] sm:$0x3] %vm295_vm12, %v294_v32   ;;  %v326_v35 = vpop.permute.xlu1 %325   ;;  %vm465_vm12 = vcmask 425328  }
  0xab   :  { %328 = vst.msk [vmem:[#allocation0] sm:$0x3] %vm327_vm15, %v326_v35   ;;  %vm497_vm15 = vcmask 376128  }
  0xad   :  { %v315_v34 = vpop.permute.xlu0 %314  }
  0xae   :  { %318 = vst.msk [vmem:[#allocation0 + $0x10] sm:$0x3] %vm316_vm14, %v315_v34   ;;  %v347_v37 = vpop.permute.xlu1 %346   ;;  %vm487_vm14 = vcmask 392528  }
  0xaf   :  { %350 = vst.msk [vmem:[#allocation0 + $0x10] sm:$0x3] %vm348_vm1, %v347_v37   ;;  %vm519_vm1 = vcmask 343328  }
  0xb1   :  { %v336_v36 = vpop.permute.xlu0 %335  }
  0xb2   :  { %339 = vst.msk [vmem:[#allocation0 + $0x8] sm:$0x3] %vm337_vm0, %v336_v36   ;;  %v368_v39 = vpop.permute.xlu1 %367   ;;  %vm508_vm0 = vcmask 359728  }
  0xb3   :  { %371 = vst.msk [vmem:[#allocation0 + $0x8] sm:$0x3] %vm369_vm3, %v368_v39   ;;  %vm540_vm3 = vcmask 310528  }
  0xb5   :  { %v358_v38 = vpop.permute.xlu0 %357  }
  0xb6   :  { %360 = vst.msk [vmem:[#allocation0] sm:$0x3] %vm359_vm2, %v358_v38   ;;  %v390_v41 = vpop.permute.xlu1 %389   ;;  %vm529_vm2 = vcmask 326928  }
  0xb7   :  { %392 = vst.msk [vmem:[#allocation0] sm:$0x3] %vm391_vm5, %v390_v41   ;;  %vm561_vm5 = vcmask 277728  }
  0xb9   :  { %v379_v40 = vpop.permute.xlu0 %378  }
  0xba   :  { %382 = vst.msk [vmem:[#allocation0 + $0x10] sm:$0x3] %vm380_vm4, %v379_v40   ;;  %v411_v43 = vpop.permute.xlu1 %410   ;;  %vm551_vm4 = vcmask 294128  }
  0xbb   :  { %414 = vst.msk [vmem:[#allocation0 + $0x10] sm:$0x3] %vm412_vm7, %v411_v43   ;;  %vm583_vm7 = vcmask 244928  }
  0xbd   :  { %v400_v42 = vpop.permute.xlu0 %399  }
  0xbe   :  { %403 = vst.msk [vmem:[#allocation0 + $0x8] sm:$0x3] %vm401_vm6, %v400_v42   ;;  %v432_v45 = vpop.permute.xlu1 %431   ;;  %vm572_vm6 = vcmask 261328  }
  0xbf   :  { %435 = vst.msk [vmem:[#allocation0 + $0x8] sm:$0x3] %vm433_vm9, %v432_v45   ;;  %vm604_vm9 = vcmask 212128  }
  0xc1   :  { %v422_v44 = vpop.permute.xlu0 %421  }
  0xc2   :  { %424 = vst.msk [vmem:[#allocation0] sm:$0x3] %vm423_vm8, %v422_v44   ;;  %v454_v47 = vpop.permute.xlu1 %453   ;;  %vm593_vm8 = vcmask 228528  }
  0xc3   :  { %456 = vst.msk [vmem:[#allocation0] sm:$0x3] %vm455_vm11, %v454_v47   ;;  %vm625_vm11 = vcmask 179328  }
  0xc5   :  { %v443_v46 = vpop.permute.xlu0 %442  }
  0xc6   :  { %446 = vst.msk [vmem:[#allocation0 + $0x10] sm:$0x3] %vm444_vm10, %v443_v46   ;;  %v475_v49 = vpop.permute.xlu1 %474   ;;  %vm615_vm10 = vcmask 195728  }
  0xc7   :  { %478 = vst.msk [vmem:[#allocation0 + $0x10] sm:$0x3] %vm476_vm13, %v475_v49   ;;  %vm647_vm13 = vcmask 146528  }
  0xc9   :  { %v464_v48 = vpop.permute.xlu0 %463  }
  0xca   :  { %467 = vst.msk [vmem:[#allocation0 + $0x8] sm:$0x3] %vm465_vm12, %v464_v48   ;;  %v496_v51 = vpop.permute.xlu1 %495   ;;  %vm636_vm12 = vcmask 162928  }
  0xcb   :  { %499 = vst.msk [vmem:[#allocation0 + $0x8] sm:$0x3] %vm497_vm15, %v496_v51   ;;  %vm668_vm15 = vcmask 113728  }
  0xcd   :  { %v486_v50 = vpop.permute.xlu0 %485  }
  0xce   :  { %488 = vst.msk [vmem:[#allocation0] sm:$0x3] %vm487_vm14, %v486_v50   ;;  %v518_v53 = vpop.permute.xlu1 %517   ;;  %vm657_vm14 = vcmask 130128  }
  0xcf   :  { %520 = vst.msk [vmem:[#allocation0] sm:$0x3] %vm519_vm1, %v518_v53   ;;  %vm689_vm1 = vcmask 80928  }
  0xd1   :  { %v507_v52 = vpop.permute.xlu0 %506  }
  0xd2   :  { %510 = vst.msk [vmem:[#allocation0 + $0x10] sm:$0x3] %vm508_vm0, %v507_v52   ;;  %v539_v55 = vpop.permute.xlu1 %538   ;;  %vm679_vm0 = vcmask 97328  }
  0xd3   :  { %542 = vst.msk [vmem:[#allocation0 + $0x10] sm:$0x3] %vm540_vm3, %v539_v55  }
  0xd5   :  { %v528_v54 = vpop.permute.xlu0 %527  }
  0xd6   :  { %531 = vst.msk [vmem:[#allocation0 + $0x8] sm:$0x3] %vm529_vm2, %v528_v54   ;;  %v560_v57 = vpop.permute.xlu1 %559   ;;  %vm700_vm2 = vcmask 64528  }
  0xd7   :  { %563 = vst.msk [vmem:[#allocation0 + $0x8] sm:$0x3] %vm561_vm5, %v560_v57  }
  0xd9   :  { %v550_v56 = vpop.permute.xlu0 %549  }
  0xda   :  { %552 = vst.msk [vmem:[#allocation0] sm:$0x3] %vm551_vm4, %v550_v56   ;;  %v582_v59 = vpop.permute.xlu1 %581  }
  0xdb   :  { %584 = vst.msk [vmem:[#allocation0] sm:$0x3] %vm583_vm7, %v582_v59  }
  0xdd   :  { %v571_v58 = vpop.permute.xlu0 %570  }
  0xde   :  { %574 = vst.msk [vmem:[#allocation0 + $0x10] sm:$0x3] %vm572_vm6, %v571_v58   ;;  %v603_v61 = vpop.permute.xlu1 %602  }
  0xdf   :  { %606 = vst.msk [vmem:[#allocation0 + $0x10] sm:$0x3] %vm604_vm9, %v603_v61  }
  0xe1   :  { %v592_v60 = vpop.permute.xlu0 %591  }
  0xe2   :  { %595 = vst.msk [vmem:[#allocation0 + $0x8] sm:$0x3] %vm593_vm8, %v592_v60   ;;  %v624_v63 = vpop.permute.xlu1 %623  }
  0xe3   :  { %627 = vst.msk [vmem:[#allocation0 + $0x8] sm:$0x3] %vm625_vm11, %v624_v63  }
  0xe5   :  { %v614_v62 = vpop.permute.xlu0 %613  }
  0xe6   :  { %616 = vst.msk [vmem:[#allocation0] sm:$0x3] %vm615_vm10, %v614_v62   ;;  %v646_v1 = vpop.permute.xlu1 %645  }
  0xe7   :  { %648 = vst.msk [vmem:[#allocation0] sm:$0x3] %vm647_vm13, %v646_v1  }
  0xe9   :  { %v635_v0 = vpop.permute.xlu0 %634  }
  0xea   :  { %638 = vst.msk [vmem:[#allocation0 + $0x10] sm:$0x3] %vm636_vm12, %v635_v0   ;;  %v667_v3 = vpop.permute.xlu1 %666  }
  0xeb   :  { %670 = vst.msk [vmem:[#allocation0 + $0x10] sm:$0x3] %vm668_vm15, %v667_v3  }
  0xed   :  { %v656_v2 = vpop.permute.xlu0 %655  }
  0xee   :  { %659 = vst.msk [vmem:[#allocation0 + $0x8] sm:$0x3] %vm657_vm14, %v656_v2   ;;  %v688_v5 = vpop.permute.xlu1 %687  }
  0xef   :  { %691 = vst.msk [vmem:[#allocation0 + $0x8] sm:$0x3] %vm689_vm1, %v688_v5  }
  0xf1   :  { %v678_v4 = vpop.permute.xlu0 %677  }
  0xf2   :  { %680 = vst.msk [vmem:[#allocation0] sm:$0x3] %vm679_vm0, %v678_v4  }
  0xf5   :  { %v699_v6 = vpop.permute.xlu0 %698  }
  0xf6   :  { %702 = vst.msk [vmem:[#allocation0 + $0x10] sm:$0x3] %vm700_vm2, %v699_v6   ;;  %v712_v8 = vld [vmem:[#allocation0 + $0x8] sm:$0x3] }
  0xf7   :  { %856 = vst [vmem:[%s1470_s1 + $0x2] sm:$0x3] %v712_v8 }
  0xf9   :  { %v707_v7 = vld [vmem:[#allocation0] sm:$0x3] }
  0xfa   :  { %710 = vst [vmem:[%s1470_s1] sm:$0x3] %v707_v7 }
  0xfd   :  { %v718_v9 = vld [vmem:[#allocation0 + $0x10] sm:$0x3] }
  0xfe   :  { %857 = vst [vmem:[%s1470_s1 + $0x4] sm:$0x3] %v718_v9 }

// kernel: actor_forward.1
= control target key start
LH: loop header
LB: loop body
LE: loop exit
PB: predicated region body
PF: predicated region fallthrough
CT: control target
= control target key end

     0   :  { %12 = vsyncpa [#allocation3], 0  ;;  %s2530_s24 = smov [#allocation2]   ;;  %s2845_s0 = inlined_call_operand.vmem [shape: f32[8,1664], index: 0, kind: input, shape index: {}]   ;;  %s2846_s1 = inlined_call_operand.vmem [shape: f32[1,1664], index: 1, kind: input, shape index: {}]   ;;  %s2847_s2 = inlined_call_operand.vmem [shape: f32[1,1664], index: 2, kind: input, shape index: {}]   ;;  %s2848_s3 = inlined_call_operand.hbm [shape: bf16[1664,256], index: 3, kind: input, shape index: {}]   ;;  %s2849_s4 = inlined_call_operand.vmem [shape: f32[1,256], index: 4, kind: input, shape index: {}]   ;;  %s2850_s5 = inlined_call_operand.vmem [shape: f32[256,128], index: 5, kind: input, shape index: {}]   ;;  %s2851_s6 = inlined_call_operand.vmem [shape: f32[1,128], index: 6, kind: input, shape index: {}]   ;;  %s2852_s7 = inlined_call_operand.vmem [shape: f32[8,128], index: 7, kind: output, shape index: {}]  }
   0x1   :  { %s24_s25 = sshll.u32 %s2530_s24, 4  ;;  %s25_s25 = int_to_ptr.vmem [resolvable:$true] %s24_s25 }
   0x2   :  { %s2516_s26 = scalar_lea.vmem %s25_s25, 26624  ;;  %p2521_p1 = scmp.lt.s32.totalorder %s25_s25, %s25_s25 }
   0x3   :  { %p2517_p0 = scmp.ne.s32.totalorder %s25_s25, %s2516_s26  ;;  %p2522_p2 = scmp.lt.s32.totalorder %s2516_s26, %s2516_s26 }
   0x5   :  { %p2523_p3 = por %p2522_p2, %p2521_p1 }
   0x7   :  { %p2524_p4 = pnand %p2523_p3, %p2517_p0 }
   0x9   :  { %2527 = shalt.err (!%p2524_p4)
}
   0xa   :  { %s2531_s27 = smov 128   ;;  %s2532_s28 = smov 8  }
   0xb   :  { %30 = dma.hbm_to_vmem [thread:$0]  %s2848_s3, 26624, %s25_s25, [#allocation3], %s2531_s27, %s2531_s27, %s2532_s28  }
   0xc   :  { %2528 = dma.done.wait [#allocation3], 26624  }
   0xd   :  { %2529 = vsyncadd [#allocation3], 4294940672  ;;  %v2188_v0 = vld [vmem:[#allocation2 + $0x74] ss:$8 sps:$4 sm:$0xff]   ;;  %v2190_v1 = vld [vmem:[#allocation2 + $0x70] ss:$8 sps:$4 sm:$0xff]   ;;  %v58_v35 = vlaneseq }
   0xe   :  { %1504 = vmatprep.subr.bf16.mxu0 %v2188_v0  ;;  %v2191_v2 = vld [vmem:[#allocation2 + $0x174] ss:$8 sps:$4 sm:$0xff]   ;;  %v2193_v3 = vld [vmem:[#allocation2 + $0x170] ss:$8 sps:$4 sm:$0xff]   ;;  %v2194_v4 = vld [vmem:[#allocation2 + $0x64] ss:$8 sps:$4 sm:$0xff]  }
   0xf   :  { %1505 = vmatpush1.bf16.msra.mxu0 %v2190_v1  ;;  %v2196_v5 = vld [vmem:[#allocation2 + $0x60] ss:$8 sps:$4 sm:$0xff]   ;;  %1545 = vmatprep.subr.bf16.mxu1 %v2191_v2  ;;  %v2197_v6 = vld [vmem:[#allocation2 + $0x164] ss:$8 sps:$4 sm:$0xff]   ;;  %v2200_v8 = vld [vmem:[#allocation2 + $0x54] ss:$8 sps:$4 sm:$0xff]  }
  0x10   :  { %1546 = vmatpush1.bf16.msra.mxu1 %v2193_v3  ;;  %1506 = vmatprep.subr.bf16.mxu0 %v2194_v4  ;;  %v2199_v7 = vld [vmem:[#allocation2 + $0x160] ss:$8 sps:$4 sm:$0xff]   ;;  %v2202_v9 = vld [vmem:[#allocation2 + $0x50] ss:$8 sps:$4 sm:$0xff]   ;;  %v2203_v10 = vld [vmem:[#allocation2 + $0x154] ss:$8 sps:$4 sm:$0xff]  }
  0x11   :  { %1547 = vmatprep.subr.bf16.mxu1 %v2197_v6  ;;  %v2206_v11 = vld [vmem:[#allocation2 + $0x44] ss:$8 sps:$4 sm:$0xff]   ;;  %v2205_v12 = vld [vmem:[#allocation2 + $0x150] ss:$8 sps:$4 sm:$0xff]   ;;  %v2208_v14 = vld [vmem:[#allocation2 + $0x40] ss:$8 sps:$4 sm:$0xff]  }
  0x12   :  { %v2209_v13 = vld [vmem:[#allocation2 + $0x144] ss:$8 sps:$4 sm:$0xff]   ;;  %v2212_v15 = vld [vmem:[#allocation2 + $0x34] ss:$8 sps:$4 sm:$0xff]   ;;  %v2211_v16 = vld [vmem:[#allocation2 + $0x140] ss:$8 sps:$4 sm:$0xff]  }
  0x13   :  { %1507 = vmatpush1.bf16.msra.mxu0 %v2196_v5  ;;  %v2215_v17 = vld [vmem:[#allocation2 + $0x134] ss:$8 sps:$4 sm:$0xff]   ;;  %v2214_v18 = vld [vmem:[#allocation2 + $0x30] ss:$8 sps:$4 sm:$0xff]   ;;  %v2218_v19 = vld [vmem:[#allocation2 + $0x24] ss:$8 sps:$4 sm:$0xff]  }
  0x14   :  { %1508 = vmatprep.subr.bf16.mxu0 %v2200_v8  ;;  %1548 = vmatpush1.bf16.msra.mxu1 %v2199_v7  ;;  %v2217_v20 = vld [vmem:[#allocation2 + $0x130] ss:$8 sps:$4 sm:$0xff]   ;;  %v2221_v21 = vld [vmem:[#allocation2 + $0x124] ss:$8 sps:$4 sm:$0xff]   ;;  %v2220_v22 = vld [vmem:[#allocation2 + $0x20] ss:$8 sps:$4 sm:$0xff]  }
  0x15   :  { %1549 = vmatprep.subr.bf16.mxu1 %v2203_v10  ;;  %v2224_v23 = vld [vmem:[#allocation2 + $0x14] ss:$8 sps:$4 sm:$0xff]   ;;  %v2223_v24 = vld [vmem:[#allocation2 + $0x120] ss:$8 sps:$4 sm:$0xff]   ;;  %v2226_v26 = vld [vmem:[#allocation2 + $0x10] ss:$8 sps:$4 sm:$0xff]  }
  0x16   :  { %v2227_v25 = vld [vmem:[#allocation2 + $0x114] ss:$8 sps:$4 sm:$0xff]   ;;  %v2230_v27 = vld [vmem:[#allocation2 + $0x4] ss:$8 sps:$4 sm:$0xff]   ;;  %v2229_v28 = vld [vmem:[#allocation2 + $0x110] ss:$8 sps:$4 sm:$0xff]  }
  0x17   :  { %1509 = vmatpush1.bf16.msra.mxu0 %v2202_v9  ;;  %v2233_v29 = vld [vmem:[#allocation2 + $0x104] ss:$8 sps:$4 sm:$0xff]   ;;  %v2232_v30 = vld [vmem:[#allocation2] ss:$8 sps:$4 sm:$0xff]   ;;  %v2236_v31 = vld [vmem:[#allocation2 + $0xf4] ss:$8 sps:$4 sm:$0xff]  }
  0x18   :  { %1510 = vmatprep.subr.bf16.mxu0 %v2206_v11  ;;  %1550 = vmatpush1.bf16.msra.mxu1 %v2205_v12  ;;  %v2235_v32 = vld [vmem:[#allocation2 + $0x100] ss:$8 sps:$4 sm:$0xff]   ;;  %v2239_v33 = vld [vmem:[#allocation2 + $0x1f4] ss:$8 sps:$4 sm:$0xff]   ;;  %v2238_v34 = vld [vmem:[#allocation2 + $0xf0] ss:$8 sps:$4 sm:$0xff]  }
  0x19   :  { %1551 = vmatprep.subr.bf16.mxu1 %v2209_v13  ;;  %v2242_v36 = vld [vmem:[#allocation2 + $0xe4] ss:$8 sps:$4 sm:$0xff]   ;;  %v2241_v37 = vld [vmem:[#allocation2 + $0x1f0] ss:$8 sps:$4 sm:$0xff]   ;;  %v2244_v39 = vld [vmem:[#allocation2 + $0xe0] ss:$8 sps:$4 sm:$0xff]  }
  0x1a   :  { %v2245_v38 = vld [vmem:[#allocation2 + $0x1e4] ss:$8 sps:$4 sm:$0xff]   ;;  %v2578_v40 = vshrl.u32 %v58_v35, 7  ;;  %v2248_v41 = vld [vmem:[#allocation2 + $0xd4] ss:$8 sps:$4 sm:$0xff]  }
  0x1b   :  { %1511 = vmatpush1.bf16.msra.mxu0 %v2208_v14  ;;  %v2247_v42 = vld [vmem:[#allocation2 + $0x1e0] ss:$8 sps:$4 sm:$0xff]   ;;  %v2251_v43 = vld [vmem:[#allocation2 + $0x1d4] ss:$8 sps:$4 sm:$0xff]   ;;  %v2250_v44 = vld [vmem:[#allocation2 + $0xd0] ss:$8 sps:$4 sm:$0xff]  }
  0x1c   :  { %1512 = vmatprep.subr.bf16.mxu0 %v2212_v15  ;;  %1552 = vmatpush1.bf16.msra.mxu1 %v2211_v16  ;;  %v2581_v45 = vsub.s32 1, %v2578_v40  ;;  %v2584_v46 = vsub.s32 3, %v2578_v40  ;;  %v2254_v47 = vld [vmem:[#allocation2 + $0xc4] ss:$8 sps:$4 sm:$0xff]   ;;  %v2253_v48 = vld [vmem:[#allocation2 + $0x1d0] ss:$8 sps:$4 sm:$0xff]  }
  0x1d   :  { %1553 = vmatprep.subr.bf16.mxu1 %v2215_v17  ;;  %v2257_v49 = vld [vmem:[#allocation2 + $0x1c4] ss:$8 sps:$4 sm:$0xff]   ;;  %v2595_v52 = vsub.s32 0, %v2578_v40  ;;  %v2256_v53 = vld [vmem:[#allocation2 + $0xc0] ss:$8 sps:$4 sm:$0xff]   ;;  %v2611_v60 = vsub.s32 2, %v2578_v40 }
  0x1e   :  { %v42_v50 = vld [vmem:[%s2845_s0 + $0x8] sm:$0xff]  ;;  %v2592_v51 = vld [vmem:[%s2846_s1] sm:$0xff]  ;;  %v2260_v57 = vld [vmem:[#allocation2 + $0xb4] ss:$8 sps:$4 sm:$0xff]   ;;  %v84_v61 = vsub.s32 6, %v2578_v40 }
  0x1f   :  { %1513 = vmatpush1.bf16.msra.mxu0 %v2214_v18  ;;  %v65_v54 = vrot.slane %v2592_v51, %v2581_v45  ;;  %v2602_v55 = vld [vmem:[%s2847_s2] sm:$0xff]  ;;  %v73_v56 = vrot.slane %v2592_v51, %v2584_v46  ;;  %v2262_v63 = vld [vmem:[#allocation2 + $0xb0] ss:$8 sps:$4 sm:$0xff]   ;;  %v2263_v2 = vld [vmem:[#allocation2 + $0x1b4] ss:$8 sps:$4 sm:$0xff]   ;;  %v61_v3 = vrot.slane %v2592_v51, %v2595_v52  ;;  %v69_v10 = vrot.slane %v2592_v51, %v2611_v60 }
  0x20   :  { %1514 = vmatprep.subr.bf16.mxu0 %v2218_v19  ;;  %1554 = vmatpush1.bf16.msra.mxu1 %v2217_v20  ;;  %v147_v58 = vrot.slane %v2602_v55, %v2581_v45  ;;  %v155_v59 = vrot.slane %v2602_v55, %v2584_v46  ;;  %v2259_v62 = vld [vmem:[#allocation2 + $0x1c0] ss:$8 sps:$4 sm:$0xff]   ;;  %v44_v1 = vld [vmem:[%s2845_s0 + $0x18] sm:$0xff]  ;;  %v2266_v8 = vld [vmem:[#allocation2 + $0xa4] ss:$8 sps:$4 sm:$0xff]   ;;  %v2625_v11 = vrot.slane %v2592_v51, %v84_v61 }
  0x21   :  { %1555 = vmatprep.subr.bf16.mxu1 %v2221_v21  ;;  %v124_v0 = vmul.f32 %v65_v54, %v42_v50  ;;  %v126_v4 = vmul.f32 %v73_v56, %v44_v1  ;;  %v41_v6 = vld [vmem:[%s2845_s0] sm:$0xff]  ;;  %v2265_v7 = vld [vmem:[#allocation2 + $0x1b0] ss:$8 sps:$4 sm:$0xff]   ;;  %v2628_v12 = vrot.slane %v2602_v55, %v84_v61  ;;  %v143_v17 = vrot.slane %v2602_v55, %v2595_v52  ;;  %v2272_v21 = vld [vmem:[#allocation2 + $0x94] ss:$8 sps:$4 sm:$0xff]  }
  0x22   :  { %v43_v14 = vld [vmem:[%s2845_s0 + $0x10] sm:$0xff]  ;;  %v2269_v15 = vld [vmem:[#allocation2 + $0x1a4] ss:$8 sps:$4 sm:$0xff]   ;;  %v123_v16 = vmul.f32 %v61_v3, %v41_v6  ;;  %v2268_v19 = vld [vmem:[#allocation2 + $0xa0] ss:$8 sps:$4 sm:$0xff]   ;;  %v80_v3 = vsub.s32 5, %v2578_v40 }
  0x23   :  { %1515 = vmatpush1.bf16.msra.mxu0 %v2220_v22  ;;  %v206_v5 = vadd.f32 %v147_v58, %v124_v0  ;;  %v208_v9 = vadd.f32 %v155_v59, %v126_v4  ;;  %v2298_v50 = vld [vmem:[#allocation2 + $0x254] ss:$8 sps:$4 sm:$0xff]   ;;  %v2296_v56 = vld [vmem:[#allocation2 + $0x250] ss:$8 sps:$4 sm:$0xff]   ;;  %v2307_v59 = vld [vmem:[#allocation2 + $0x344] ss:$8 sps:$4 sm:$0xff]  }
  0x24   :  { %1516 = vmatprep.subr.bf16.mxu0 %v2224_v23  ;;  %1556 = vmatpush1.bf16.msra.mxu1 %v2223_v24  ;;  %v125_v23 = vmul.f32 %v69_v10, %v43_v14  ;;  %v151_v24 = vrot.slane %v2602_v55, %v2611_v60  ;;  %v2301_v54 = vld [vmem:[#allocation2 + $0x354] ss:$8 sps:$4 sm:$0xff]   ;;  %v2299_v58 = vld [vmem:[#allocation2 + $0x350] ss:$8 sps:$4 sm:$0xff]   ;;  %v2302_v61 = vld [vmem:[#allocation2 + $0x240] ss:$8 sps:$4 sm:$0xff]   ;;  %v81_v10 = vrot.slane %v2592_v51, %v80_v3 }
  0x25   :  { %1557 = vmatprep.subr.bf16.mxu1 %v2227_v25  ;;  %v219_v13 = vmax.f32 %v206_v5, 0.0  ;;  %v221_v18 = vmax.f32 %v208_v9, 0.0  ;;  %v2271_v25 = vld [vmem:[#allocation2 + $0x1a0] ss:$8 sps:$4 sm:$0xff]   ;;  %v2313_v0 = vld [vmem:[#allocation2 + $0x334] ss:$8 sps:$4 sm:$0xff]  }
  0x26   :  { %v2308_v1 = vld [vmem:[#allocation2 + $0x230] ss:$8 sps:$4 sm:$0xff]   ;;  %v2639_v4 = vsub.s32 4, %v2578_v40  ;;  %v2319_v6 = vld [vmem:[#allocation2 + $0x324] ss:$8 sps:$4 sm:$0xff]  }
  0x27   :  { %1517 = vmatpush1.bf16.msra.mxu0 %v2226_v26  ;;  %v232_v20 = vpack.c.bf16 %v219_v13, %v219_v13  ;;  %v234_v22 = vpack.c.bf16 %v221_v18, %v221_v18  ;;  %v2275_v26 = vld [vmem:[#allocation2 + $0x194] ss:$8 sps:$4 sm:$0xff]   ;;  %v2311_v5 = vld [vmem:[#allocation2 + $0x330] ss:$8 sps:$4 sm:$0xff]   ;;  %v2317_v14 = vld [vmem:[#allocation2 + $0x320] ss:$8 sps:$4 sm:$0xff]  }
  0x28   :  { %1518 = vmatprep.subr.bf16.mxu0 %v2230_v27  ;;  %1558 = vmatpush1.bf16.msra.mxu1 %v2229_v28  ;;  %v205_v27 = vadd.f32 %v143_v17, %v123_v16  ;;  %v2274_v28 = vld [vmem:[#allocation2 + $0x90] ss:$8 sps:$4 sm:$0xff]   ;;  %v2322_v9 = vld [vmem:[#allocation2 + $0x214] ss:$8 sps:$4 sm:$0xff]   ;;  %v77_v13 = vrot.slane %v2592_v51, %v2639_v4  ;;  %v163_v16 = vrot.slane %v2602_v55, %v80_v3  ;;  %v2362_v3 = vld [vmem:[#allocation2 + $0x2a0] ss:$8 sps:$4 sm:$0xff]  }
  0x29   :  { %1559 = vmatprep.subr.bf16.mxu1 %v2233_v29  ;;  %1536 = vmatprep.mubr.bf16.mxu0 %v232_v20  ;;  %v2278_v29 = vld [vmem:[#allocation2 + $0x84] ss:$8 sps:$4 sm:$0xff]   ;;  %v159_v17 = vrot.slane %v2602_v55, %v2639_v4  ;;  %v2320_v18 = vld [vmem:[#allocation2 + $0x210] ss:$8 sps:$4 sm:$0xff]  }
  0x2a   :  { %1577 = vmatprep.mubr.bf16.mxu1 %v234_v22  ;;  %v45_v20 = vld [vmem:[%s2845_s0 + $0x20] sm:$0xff] }
  0x2b   :  { %1519 = vmatpush1.bf16.msra.mxu0 %v2232_v30  ;;  %v207_v30 = vadd.f32 %v151_v24, %v125_v23  ;;  %v127_v23 = vmul.f32 %v77_v13, %v45_v20  ;;  %v2379_v13 = vld [vmem:[#allocation2 + $0x384] ss:$8 sps:$4 sm:$0xff]   ;;  %v2380_v20 = vld [vmem:[#allocation2 + $0x470] ss:$8 sps:$4 sm:$0xff]  }
  0x2c   :  { %1520 = vmatprep.subr.bf16.mxu0 %v2236_v31  ;;  %1560 = vmatpush1.bf16.msra.mxu1 %v2235_v32  ;;  %v2277_v31 = vld [vmem:[#allocation2 + $0x190] ss:$8 sps:$4 sm:$0xff]   ;;  %v2281_v32 = vld [vmem:[#allocation2 + $0x184] ss:$8 sps:$4 sm:$0xff]  }
  0x2d   :  { %1561 = vmatprep.subr.bf16.mxu1 %v2239_v33  ;;  %v218_v33 = vmax.f32 %v205_v27, 0.0  ;;  %v2331_v27 = vld [vmem:[#allocation2 + $0x304] ss:$8 sps:$4 sm:$0xff]  }
  0x2f   :  { %1521 = vmatpush2.bf16.msra.mxu0 %v2238_v34  ;;  %v2280_v34 = vld [vmem:[#allocation2 + $0x80] ss:$8 sps:$4 sm:$0xff]  }
  0x30   :  { %1522 = vmatprep.subr.bf16.mxu0 %v2242_v36  ;;  %1562 = vmatpush2.bf16.msra.mxu1 %v2241_v37  ;;  %v2286_v36 = vld [vmem:[#allocation2 + $0x274] ss:$8 sps:$4 sm:$0xff]   ;;  %v220_v37 = vmax.f32 %v207_v30, 0.0 }
  0x31   :  { %1563 = vmatprep.subr.bf16.mxu1 %v2245_v38  ;;  %v2283_v38 = vld [vmem:[#allocation2 + $0x180] ss:$8 sps:$4 sm:$0xff]  }
  0x33   :  { %1523 = vmatpush2.bf16.msra.mxu0 %v2244_v39  ;;  %v231_v39 = vpack.c.bf16 %v218_v33, %v218_v33 }
  0x34   :  { %1524 = vmatprep.subr.bf16.mxu0 %v2248_v41  ;;  %1564 = vmatpush2.bf16.msra.mxu1 %v2247_v42  ;;  %v2289_v41 = vld [vmem:[#allocation2 + $0x374] ss:$8 sps:$4 sm:$0xff]   ;;  %v2284_v42 = vld [vmem:[#allocation2 + $0x270] ss:$8 sps:$4 sm:$0xff]  }
  0x35   :  { %1565 = vmatprep.subr.bf16.mxu1 %v2251_v43  ;;  %v233_v43 = vpack.c.bf16 %v220_v37, %v220_v37  ;;  %v2329_v37 = vld [vmem:[#allocation2 + $0x300] ss:$8 sps:$4 sm:$0xff]  }
  0x37   :  { %1525 = vmatpush2.bf16.msra.mxu0 %v2250_v44  ;;  %v2292_v44 = vld [vmem:[#allocation2 + $0x264] ss:$8 sps:$4 sm:$0xff]  }
  0x38   :  { %1526 = vmatprep.subr.bf16.mxu0 %v2254_v47  ;;  %1566 = vmatpush2.bf16.msra.mxu1 %v2253_v48  ;;  %v2287_v47 = vld [vmem:[#allocation2 + $0x370] ss:$8 sps:$4 sm:$0xff]   ;;  %v2295_v48 = vld [vmem:[#allocation2 + $0x364] ss:$8 sps:$4 sm:$0xff]  }
  0x39   :  { %1567 = vmatprep.subr.bf16.mxu1 %v2257_v49  ;;  %v2290_v49 = vld [vmem:[#allocation2 + $0x260] ss:$8 sps:$4 sm:$0xff]  }
  0x3b   :  { %1527 = vmatpush2.bf16.msra.mxu0 %v2256_v53  ;;  %v2293_v53 = vld [vmem:[#allocation2 + $0x360] ss:$8 sps:$4 sm:$0xff]  }
  0x3c   :  { %1528 = vmatprep.subr.bf16.mxu0 %v2260_v57  ;;  %1568 = vmatpush2.bf16.msra.mxu1 %v2259_v62  ;;  %v2304_v57 = vld [vmem:[#allocation2 + $0x244] ss:$8 sps:$4 sm:$0xff]   ;;  %v2310_v62 = vld [vmem:[#allocation2 + $0x234] ss:$8 sps:$4 sm:$0xff]  }
  0x3d   :  { %1569 = vmatprep.subr.bf16.mxu1 %v2263_v2  ;;  %v2316_v2 = vld [vmem:[#allocation2 + $0x224] ss:$8 sps:$4 sm:$0xff]  }
  0x3f   :  { %1529 = vmatpush2.bf16.msra.mxu0 %v2262_v63  ;;  %v2305_v63 = vld [vmem:[#allocation2 + $0x340] ss:$8 sps:$4 sm:$0xff]  }
  0x40   :  { %1530 = vmatprep.subr.bf16.mxu0 %v2266_v8  ;;  %1570 = vmatpush2.bf16.msra.mxu1 %v2265_v7  ;;  %v88_v7 = vsub.s32 7, %v2578_v40  ;;  %v2314_v8 = vld [vmem:[#allocation2 + $0x220] ss:$8 sps:$4 sm:$0xff]  }
  0x41   :  { %1571 = vmatprep.subr.bf16.mxu1 %v2269_v15  ;;  %v2325_v15 = vld [vmem:[#allocation2 + $0x314] ss:$8 sps:$4 sm:$0xff]  }
  0x42   :  { %v89_v40 = vrot.slane %v2592_v51, %v88_v7  ;;  %v171_v24 = vrot.slane %v2602_v55, %v88_v7  ;;  %v48_v51 = vld [vmem:[%s2845_s0 + $0x38] sm:$0xff]  ;;  %v2326_v55 = vld [vmem:[#allocation2 + $0x200] ss:$8 sps:$4 sm:$0xff]  }
  0x43   :  { %1531 = vmatpush2.bf16.msra.mxu0 %v2268_v19  ;;  %v46_v19 = vld [vmem:[%s2845_s0 + $0x28] sm:$0xff]  ;;  %v2373_v7 = vld [vmem:[#allocation2 + $0x394] ss:$8 sps:$4 sm:$0xff]  }
  0x44   :  { %1532 = vmatprep.subr.bf16.mxu0 %v2272_v21  ;;  %1572 = vmatpush2.bf16.msra.mxu1 %v2271_v25  ;;  %v2328_v21 = vld [vmem:[#allocation2 + $0x204] ss:$8 sps:$4 sm:$0xff]   ;;  %v128_v22 = vmul.f32 %v81_v10, %v46_v19  ;;  %v2323_v25 = vld [vmem:[#allocation2 + $0x310] ss:$8 sps:$4 sm:$0xff]   ;;  %v130_v30 = vmul.f32 %v89_v40, %v48_v51  ;;  %v2377_v40 = vld [vmem:[#allocation2 + $0x380] ss:$8 sps:$4 sm:$0xff]  }
  0x45   :  { %1573 = vmatprep.subr.bf16.mxu1 %v2275_v26  ;;  %v47_v26 = vld [vmem:[%s2845_s0 + $0x30] sm:$0xff] }
  0x46   :  { %v2371_v10 = vld [vmem:[#allocation2 + $0x390] ss:$8 sps:$4 sm:$0xff]   ;;  %v2385_v19 = vld [vmem:[#allocation2 + $0x574] ss:$8 sps:$4 sm:$0xff]  }
  0x47   :  { %1533 = vmatpush2.bf16.msra.mxu0 %v2274_v28  ;;  %v210_v28 = vadd.f32 %v163_v16, %v128_v22  ;;  %v2382_v16 = vld [vmem:[#allocation2 + $0x474] ss:$8 sps:$4 sm:$0xff]   ;;  %v2388_v22 = vld [vmem:[#allocation2 + $0x464] ss:$8 sps:$4 sm:$0xff]  }
  0x48   :  { %1534 = vmatprep.subr.bf16.mxu0 %v2278_v29  ;;  %1574 = vmatpush2.bf16.msra.mxu1 %v2277_v31  ;;  %v2662_v29 = vadd.f32 %v159_v17, %v127_v23  ;;  %v129_v31 = vmul.f32 %v2625_v11, %v47_v26  ;;  %v2383_v23 = vld [vmem:[#allocation2 + $0x570] ss:$8 sps:$4 sm:$0xff]   ;;  %v2394_v51 = vld [vmem:[#allocation2 + $0x454] ss:$8 sps:$4 sm:$0xff]   ;;  %v50_v26 = vld [vmem:[%s2845_s0 + $0x48] sm:$0xff] }
  0x49   :  { %1575 = vmatprep.subr.bf16.mxu1 %v2281_v32  ;;  %v2334_v32 = vld [vmem:[#allocation2 + $0x2f4] ss:$8 sps:$4 sm:$0xff]   ;;  %v223_v33 = vmax.f32 %v210_v28, 0.0  ;;  %v2681_v28 = vld [vmem:[%s2847_s2 + $0x8] sm:$0x1f] }
  0x4b   :  { %1535 = vmatpush2.bf16.msra.mxu0 %v2280_v34  ;;  %v212_v34 = vadd.f32 %v171_v24, %v130_v30  ;;  %v2391_v24 = vld [vmem:[#allocation2 + $0x564] ss:$8 sps:$4 sm:$0xff]  }
  0x4c   :  { %1586 = vmatprep.subr.bf16.mxu0 %v2286_v36  ;;  %1576 = vmatpush2.bf16.msra.mxu1 %v2283_v38  ;;  %v2666_v36 = vadd.f32 %v2628_v12, %v129_v31  ;;  %v2337_v38 = vld [vmem:[#allocation2 + $0x3f4] ss:$8 sps:$4 sm:$0xff]   ;;  %v2338_v12 = vld [vmem:[#allocation2 + $0x2e0] ss:$8 sps:$4 sm:$0xff]   ;;  %v179_v31 = vrot.slane %v2681_v28, %v2581_v45 }
  0x4d   :  { %1627 = vmatprep.subr.bf16.mxu1 %v2289_v41  ;;  %v225_v41 = vmax.f32 %v212_v34, 0.0  ;;  %v187_v34 = vrot.slane %v2681_v28, %v2584_v46 }
  0x4e   :  { %1537 = vmatmul.mubr.bf16.vlgmr.msra.gmra.mxu0 %v231_v39  ;;  %v236_v39 = vpack.c.bf16 %v223_v33, %v223_v33  ;;  %v224_v17 = vmax.f32 %v2666_v36, 0.0  ;;  %v2392_v36 = vld [vmem:[#allocation2 + $0x450] ss:$8 sps:$4 sm:$0xff]  }
  0x4f   :  { %1587 = vmatpush1.bf16.msra.mxu0 %v2284_v42  ;;  %1578 = vmatmul.mubr.bf16.vlgmr.msra.gmra.mxu1 %v233_v43  ;;  %v2332_v42 = vld [vmem:[#allocation2 + $0x2f0] ss:$8 sps:$4 sm:$0xff]   ;;  %v2340_v43 = vld [vmem:[#allocation2 + $0x2e4] ss:$8 sps:$4 sm:$0xff]   ;;  %v238_v11 = vpack.c.bf16 %v225_v41, %v225_v41 }
  0x50   :  { %1588 = vmatprep.subr.bf16.mxu0 %v2292_v44  ;;  %1628 = vmatpush1.bf16.msra.mxu1 %v2287_v47  ;;  %v2335_v44 = vld [vmem:[#allocation2 + $0x3f0] ss:$8 sps:$4 sm:$0xff]   ;;  %v2343_v47 = vld [vmem:[#allocation2 + $0x3e4] ss:$8 sps:$4 sm:$0xff]  }
  0x51   :  { %1629 = vmatprep.subr.bf16.mxu1 %v2295_v48  ;;  %1618 = vmatprep.mubr.bf16.mxu0 %v236_v39  ;;  %v2346_v48 = vld [vmem:[#allocation2 + $0x2d4] ss:$8 sps:$4 sm:$0xff]   ;;  %v2395_v41 = vld [vmem:[#allocation2 + $0x550] ss:$8 sps:$4 sm:$0xff]  }
  0x52   :  { %1659 = vmatprep.mubr.bf16.mxu1 %v238_v11 }
  0x53   :  { %1589 = vmatpush1.bf16.msra.mxu0 %v2290_v49  ;;  %v2341_v49 = vld [vmem:[#allocation2 + $0x3e0] ss:$8 sps:$4 sm:$0xff]  }
  0x54   :  { %1590 = vmatprep.subr.bf16.mxu0 %v2298_v50  ;;  %1630 = vmatpush1.bf16.msra.mxu1 %v2293_v53  ;;  %v2349_v50 = vld [vmem:[#allocation2 + $0x3d4] ss:$8 sps:$4 sm:$0xff]   ;;  %v2344_v53 = vld [vmem:[#allocation2 + $0x2d0] ss:$8 sps:$4 sm:$0xff]  }
  0x55   :  { %1631 = vmatprep.subr.bf16.mxu1 %v2301_v54  ;;  %v2352_v54 = vld [vmem:[#allocation2 + $0x2c4] ss:$8 sps:$4 sm:$0xff]  }
  0x57   :  { %1591 = vmatpush1.bf16.msra.mxu0 %v2296_v56  ;;  %v2347_v56 = vld [vmem:[#allocation2 + $0x3d0] ss:$8 sps:$4 sm:$0xff]  }
  0x58   :  { %1592 = vmatprep.subr.bf16.mxu0 %v2304_v57  ;;  %1632 = vmatpush1.bf16.msra.mxu1 %v2299_v58  ;;  %v2355_v57 = vld [vmem:[#allocation2 + $0x3c4] ss:$8 sps:$4 sm:$0xff]   ;;  %v2350_v58 = vld [vmem:[#allocation2 + $0x2c0] ss:$8 sps:$4 sm:$0xff]  }
  0x59   :  { %1633 = vmatprep.subr.bf16.mxu1 %v2307_v59  ;;  %v2358_v59 = vld [vmem:[#allocation2 + $0x2b4] ss:$8 sps:$4 sm:$0xff]  }
  0x5b   :  { %1593 = vmatpush1.bf16.msra.mxu0 %v2302_v61  ;;  %v2353_v61 = vld [vmem:[#allocation2 + $0x3c0] ss:$8 sps:$4 sm:$0xff]  }
  0x5c   :  { %1594 = vmatprep.subr.bf16.mxu0 %v2310_v62  ;;  %1634 = vmatpush1.bf16.msra.mxu1 %v2305_v63  ;;  %v2361_v62 = vld [vmem:[#allocation2 + $0x3b4] ss:$8 sps:$4 sm:$0xff]   ;;  %v2356_v63 = vld [vmem:[#allocation2 + $0x2b0] ss:$8 sps:$4 sm:$0xff]  }
  0x5d   :  { %1635 = vmatprep.subr.bf16.mxu1 %v2313_v0  ;;  %v2364_v0 = vld [vmem:[#allocation2 + $0x2a4] ss:$8 sps:$4 sm:$0xff]  }
  0x5f   :  { %1595 = vmatpush1.bf16.msra.mxu0 %v2308_v1  ;;  %v2359_v1 = vld [vmem:[#allocation2 + $0x3b0] ss:$8 sps:$4 sm:$0xff]  }
  0x60   :  { %1596 = vmatprep.subr.bf16.mxu0 %v2316_v2  ;;  %1636 = vmatpush1.bf16.msra.mxu1 %v2311_v5  ;;  %v2367_v2 = vld [vmem:[#allocation2 + $0x3a4] ss:$8 sps:$4 sm:$0xff]   ;;  %v2370_v5 = vld [vmem:[#allocation2 + $0x294] ss:$8 sps:$4 sm:$0xff]  }
  0x61   :  { %1637 = vmatprep.subr.bf16.mxu1 %v2319_v6  ;;  %v2365_v6 = vld [vmem:[#allocation2 + $0x3a0] ss:$8 sps:$4 sm:$0xff]  }
  0x63   :  { %1597 = vmatpush1.bf16.msra.mxu0 %v2314_v8  ;;  %v2368_v8 = vld [vmem:[#allocation2 + $0x290] ss:$8 sps:$4 sm:$0xff]  }
  0x64   :  { %1598 = vmatprep.subr.bf16.mxu0 %v2322_v9  ;;  %1638 = vmatpush1.bf16.msra.mxu1 %v2317_v14  ;;  %v2376_v9 = vld [vmem:[#allocation2 + $0x284] ss:$8 sps:$4 sm:$0xff]   ;;  %v222_v14 = vmax.f32 %v2662_v29, 0.0  ;;  %v2389_v29 = vld [vmem:[#allocation2 + $0x560] ss:$8 sps:$4 sm:$0xff]  }
  0x65   :  { %1639 = vmatprep.subr.bf16.mxu1 %v2325_v15  ;;  %v2374_v15 = vld [vmem:[#allocation2 + $0x280] ss:$8 sps:$4 sm:$0xff]  }
  0x67   :  { %1599 = vmatpush1.bf16.msra.mxu0 %v2320_v18  ;;  %v235_v18 = vpack.c.bf16 %v222_v14, %v222_v14  ;;  %v2433_v14 = vld [vmem:[#allocation2 + $0x5f4] ss:$8 sps:$4 sm:$0xff]  }
  0x68   :  { %1600 = vmatprep.subr.bf16.mxu0 %v2328_v21  ;;  %1640 = vmatpush1.bf16.msra.mxu1 %v2323_v25  ;;  %v237_v21 = vpack.c.bf16 %v224_v17, %v224_v17  ;;  %v2386_v25 = vld [vmem:[#allocation2 + $0x460] ss:$8 sps:$4 sm:$0xff]   ;;  %v2431_v17 = vld [vmem:[#allocation2 + $0x5f0] ss:$8 sps:$4 sm:$0xff]  }
  0x69   :  { %1641 = vmatprep.subr.bf16.mxu1 %v2331_v27  ;;  %v2676_v27 = vld [vmem:[%s2846_s1 + $0x8] sm:$0x1f] }
  0x6a   :  { %v97_v30 = vrot.slane %v2676_v27, %v2581_v45  ;;  %v105_v33 = vrot.slane %v2676_v27, %v2584_v46  ;;  %v2401_v46 = vld [vmem:[#allocation2 + $0x540] ss:$8 sps:$4 sm:$0xff]  }
  0x6b   :  { %1601 = vmatpush1.bf16.msra.mxu0 %v2326_v55  ;;  %v2397_v55 = vld [vmem:[#allocation2 + $0x554] ss:$8 sps:$4 sm:$0xff]  }
  0x6c   :  { %1602 = vmatprep.subr.bf16.mxu0 %v2334_v32  ;;  %1642 = vmatpush1.bf16.msra.mxu1 %v2329_v37  ;;  %v52_v32 = vld [vmem:[%s2845_s0 + $0x58] sm:$0xff]  ;;  %v132_v37 = vmul.f32 %v97_v30, %v50_v26 }
  0x6d   :  { %1643 = vmatprep.subr.bf16.mxu1 %v2337_v38  ;;  %v2400_v38 = vld [vmem:[#allocation2 + $0x444] ss:$8 sps:$4 sm:$0xff]   ;;  %v134_v39 = vmul.f32 %v105_v33, %v52_v32  ;;  %v2454_v26 = vld [vmem:[#allocation2 + $0x4b4] ss:$8 sps:$4 sm:$0xff]  }
  0x6e   :  { %v2457_v30 = vld [vmem:[#allocation2 + $0x5b4] ss:$8 sps:$4 sm:$0xff]   ;;  %v49_v32 = vld [vmem:[%s2845_s0 + $0x40] sm:$0xff] }
  0x6f   :  { %1603 = vmatpush2.bf16.msra.mxu0 %v2332_v42  ;;  %v214_v42 = vadd.f32 %v179_v31, %v132_v37  ;;  %v216_v11 = vadd.f32 %v187_v34, %v134_v39  ;;  %v93_v31 = vrot.slane %v2676_v27, %v2595_v52  ;;  %v2460_v33 = vld [vmem:[#allocation2 + $0x4a4] ss:$8 sps:$4 sm:$0xff]   ;;  %v101_v34 = vrot.slane %v2676_v27, %v2611_v60  ;;  %v51_v37 = vld [vmem:[%s2845_s0 + $0x50] sm:$0xff] }
  0x70   :  { %1604 = vmatprep.subr.bf16.mxu0 %v2340_v43  ;;  %1644 = vmatpush2.bf16.msra.mxu1 %v2335_v44  ;;  %v2403_v43 = vld [vmem:[#allocation2 + $0x544] ss:$8 sps:$4 sm:$0xff]   ;;  %v2398_v44 = vld [vmem:[#allocation2 + $0x440] ss:$8 sps:$4 sm:$0xff]  }
  0x71   :  { %1645 = vmatprep.subr.bf16.mxu1 %v2343_v47  ;;  %v227_v47 = vmax.f32 %v214_v42, 0.0  ;;  %v131_v39 = vmul.f32 %v93_v31, %v49_v32  ;;  %v2458_v42 = vld [vmem:[#allocation2 + $0x4a0] ss:$8 sps:$4 sm:$0xff]  }
  0x72   :  { %v1820_v32 = vld [vmem:[%s2850_s5 + $0xe8] sm:$0xff] }
  0x73   :  { %1605 = vmatpush2.bf16.msra.mxu0 %v2338_v12  ;;  %v2406_v12 = vld [vmem:[#allocation2 + $0x434] ss:$8 sps:$4 sm:$0xff]  }
  0x74   :  { %1606 = vmatprep.subr.bf16.mxu0 %v2346_v48  ;;  %1646 = vmatpush2.bf16.msra.mxu1 %v2341_v49  ;;  %v229_v48 = vmax.f32 %v216_v11, 0.0  ;;  %v240_v49 = vpack.c.bf16 %v227_v47, %v227_v47  ;;  %v133_v11 = vmul.f32 %v101_v34, %v51_v37  ;;  %v2469_v47 = vld [vmem:[#allocation2 + $0x594] ss:$8 sps:$4 sm:$0xff]   ;;  %v1804_v34 = vld [vmem:[%s2850_s5 + $0x68] sm:$0xff]  ;;  %v1803_v37 = vld [vmem:[%s2850_s5 + $0x60] sm:$0xff] }
  0x75   :  { %1647 = vmatprep.subr.bf16.mxu1 %v2349_v50  ;;  %v109_v50 = vrot.slane %v2676_v27, %v2639_v4  ;;  %v183_v27 = vrot.slane %v2681_v28, %v2611_v60 }
  0x77   :  { %1607 = vmatpush2.bf16.msra.mxu0 %v2344_v53  ;;  %v2409_v53 = vld [vmem:[#allocation2 + $0x534] ss:$8 sps:$4 sm:$0xff]  }
  0x78   :  { %1608 = vmatprep.subr.bf16.mxu0 %v2352_v54  ;;  %1648 = vmatpush2.bf16.msra.mxu1 %v2347_v56  ;;  %v242_v54 = vpack.c.bf16 %v229_v48, %v229_v48  ;;  %v2404_v56 = vld [vmem:[#allocation2 + $0x430] ss:$8 sps:$4 sm:$0xff]  }
  0x79   :  { %1649 = vmatprep.subr.bf16.mxu1 %v2355_v57  ;;  %v191_v57 = vrot.slane %v2681_v28, %v2639_v4  ;;  %v2413_v4 = vld [vmem:[#allocation2 + $0x520] ss:$8 sps:$4 sm:$0xff]   ;;  %v2464_v48 = vld [vmem:[#allocation2 + $0x490] ss:$8 sps:$4 sm:$0xff]  }
  0x7b   :  { %1609 = vmatpush2.bf16.msra.mxu0 %v2350_v58  ;;  %v2412_v58 = vld [vmem:[#allocation2 + $0x424] ss:$8 sps:$4 sm:$0xff]  }
  0x7c   :  { %1610 = vmatprep.subr.bf16.mxu0 %v2358_v59  ;;  %1650 = vmatpush2.bf16.msra.mxu1 %v2353_v61  ;;  %v53_v59 = vld [vmem:[%s2845_s0 + $0x60] sm:$0xff]  ;;  %v2407_v61 = vld [vmem:[#allocation2 + $0x530] ss:$8 sps:$4 sm:$0xff]  }
  0x7d   :  { %1651 = vmatprep.subr.bf16.mxu1 %v2361_v62  ;;  %v135_v62 = vmul.f32 %v109_v50, %v53_v59  ;;  %v2467_v50 = vld [vmem:[#allocation2 + $0x590] ss:$8 sps:$4 sm:$0xff]  }
  0x7e   :  { %v2476_v59 = vld [vmem:[#allocation2 + $0x670] ss:$8 sps:$4 sm:$0xff]  }
  0x7f   :  { %1611 = vmatpush2.bf16.msra.mxu0 %v2356_v63  ;;  %v2415_v63 = vld [vmem:[#allocation2 + $0x524] ss:$8 sps:$4 sm:$0xff]  }
  0x80   :  { %1612 = vmatprep.subr.bf16.mxu0 %v2364_v0  ;;  %1652 = vmatpush2.bf16.msra.mxu1 %v2359_v1  ;;  %v2410_v0 = vld [vmem:[#allocation2 + $0x420] ss:$8 sps:$4 sm:$0xff]   ;;  %v2701_v1 = vadd.f32 %v191_v57, %v135_v62  ;;  %v2478_v57 = vld [vmem:[#allocation2 + $0x674] ss:$8 sps:$4 sm:$0xff]   ;;  %v2481_v62 = vld [vmem:[#allocation2 + $0x664] ss:$8 sps:$4 sm:$0xff]  }
  0x81   :  { %1653 = vmatprep.subr.bf16.mxu1 %v2367_v2  ;;  %v2418_v2 = vld [vmem:[#allocation2 + $0x414] ss:$8 sps:$4 sm:$0xff]  }
  0x83   :  { %1613 = vmatpush2.bf16.msra.mxu0 %v2362_v3  ;;  %v2421_v3 = vld [vmem:[#allocation2 + $0x514] ss:$8 sps:$4 sm:$0xff]  }
  0x84   :  { %1614 = vmatprep.subr.bf16.mxu0 %v2370_v5  ;;  %1654 = vmatpush2.bf16.msra.mxu1 %v2365_v6  ;;  %v2416_v5 = vld [vmem:[#allocation2 + $0x410] ss:$8 sps:$4 sm:$0xff]   ;;  %v2424_v6 = vld [vmem:[#allocation2 + $0x404] ss:$8 sps:$4 sm:$0xff]  }
  0x85   :  { %1655 = vmatprep.subr.bf16.mxu1 %v2373_v7  ;;  %v2419_v7 = vld [vmem:[#allocation2 + $0x510] ss:$8 sps:$4 sm:$0xff]  }
  0x87   :  { %1615 = vmatpush2.bf16.msra.mxu0 %v2368_v8  ;;  %v2427_v8 = vld [vmem:[#allocation2 + $0x504] ss:$8 sps:$4 sm:$0xff]  }
  0x88   :  { %1616 = vmatprep.subr.bf16.mxu0 %v2376_v9  ;;  %1656 = vmatpush2.bf16.msra.mxu1 %v2371_v10  ;;  %v2422_v9 = vld [vmem:[#allocation2 + $0x400] ss:$8 sps:$4 sm:$0xff]   ;;  %v2430_v10 = vld [vmem:[#allocation2 + $0x4f4] ss:$8 sps:$4 sm:$0xff]  }
  0x89   :  { %1657 = vmatprep.subr.bf16.mxu1 %v2379_v13  ;;  %v2425_v13 = vld [vmem:[#allocation2 + $0x500] ss:$8 sps:$4 sm:$0xff]  }
  0x8b   :  { %1617 = vmatpush2.bf16.msra.mxu0 %v2374_v15  ;;  %v2428_v15 = vld [vmem:[#allocation2 + $0x4f0] ss:$8 sps:$4 sm:$0xff]  }
  0x8c   :  { %1668 = vmatprep.subr.bf16.mxu0 %v2382_v16  ;;  %1658 = vmatpush2.bf16.msra.mxu1 %v2377_v40  ;;  %v2436_v16 = vld [vmem:[#allocation2 + $0x4e4] ss:$8 sps:$4 sm:$0xff]  }
  0x8d   :  { %1709 = vmatprep.subr.bf16.mxu1 %v2385_v19  ;;  %v2439_v40 = vld [vmem:[#allocation2 + $0x5e4] ss:$8 sps:$4 sm:$0xff]   ;;  %v2442_v19 = vld [vmem:[#allocation2 + $0x4d4] ss:$8 sps:$4 sm:$0xff]  }
  0x8e   :  { %1619 = vmatmul.mubr.bf16.vlgmr.msra.gmra.mxu0 %v235_v18  ;;  %v2434_v18 = vld [vmem:[#allocation2 + $0x4e0] ss:$8 sps:$4 sm:$0xff]  }
  0x8f   :  { %1669 = vmatpush1.bf16.msra.mxu0 %v2380_v20  ;;  %1660 = vmatmul.mubr.bf16.vlgmr.msra.gmra.mxu1 %v237_v21  ;;  %v2437_v20 = vld [vmem:[#allocation2 + $0x5e0] ss:$8 sps:$4 sm:$0xff]   ;;  %v2445_v21 = vld [vmem:[#allocation2 + $0x5d4] ss:$8 sps:$4 sm:$0xff]  }
  0x90   :  { %1670 = vmatprep.subr.bf16.mxu0 %v2388_v22  ;;  %1710 = vmatpush1.bf16.msra.mxu1 %v2383_v23  ;;  %v2440_v22 = vld [vmem:[#allocation2 + $0x4d0] ss:$8 sps:$4 sm:$0xff]   ;;  %v2448_v23 = vld [vmem:[#allocation2 + $0x4c4] ss:$8 sps:$4 sm:$0xff]  }
  0x91   :  { %1711 = vmatprep.subr.bf16.mxu1 %v2391_v24  ;;  %1700 = vmatprep.mubr.bf16.mxu0 %v240_v49  ;;  %v2443_v24 = vld [vmem:[#allocation2 + $0x5d0] ss:$8 sps:$4 sm:$0xff]   ;;  %v215_v49 = vadd.f32 %v183_v27, %v133_v11  ;;  %v1800_v11 = vld [vmem:[%s2850_s5 + $0x48] sm:$0xff]  ;;  %v1815_v27 = vld [vmem:[%s2850_s5 + $0xc0] sm:$0xff] }
  0x92   :  { %1741 = vmatprep.mubr.bf16.mxu1 %v242_v54 }
  0x93   :  { %1671 = vmatpush1.bf16.msra.mxu0 %v2386_v25  ;;  %v2451_v25 = vld [vmem:[#allocation2 + $0x5c4] ss:$8 sps:$4 sm:$0xff]   ;;  %v228_v60 = vmax.f32 %v215_v49, 0.0 }
  0x94   :  { %1672 = vmatprep.subr.bf16.mxu0 %v2394_v51  ;;  %1712 = vmatpush1.bf16.msra.mxu1 %v2389_v29  ;;  %v2446_v51 = vld [vmem:[#allocation2 + $0x4c0] ss:$8 sps:$4 sm:$0xff]  }
  0x95   :  { %1713 = vmatprep.subr.bf16.mxu1 %v2397_v55  ;;  %v2449_v29 = vld [vmem:[#allocation2 + $0x5c0] ss:$8 sps:$4 sm:$0xff]   ;;  %v2452_v55 = vld [vmem:[#allocation2 + $0x4b0] ss:$8 sps:$4 sm:$0xff]  }
  0x96   :  { %v1812_v49 = vld [vmem:[%s2850_s5 + $0xa8] sm:$0xff] }
  0x97   :  { %1673 = vmatpush1.bf16.msra.mxu0 %v2392_v36  ;;  %v2455_v36 = vld [vmem:[#allocation2 + $0x5b0] ss:$8 sps:$4 sm:$0xff]  }
  0x98   :  { %1674 = vmatprep.subr.bf16.mxu0 %v2400_v38  ;;  %1714 = vmatpush1.bf16.msra.mxu1 %v2395_v41  ;;  %v2463_v38 = vld [vmem:[#allocation2 + $0x5a4] ss:$8 sps:$4 sm:$0xff]   ;;  %v175_v41 = vrot.slane %v2681_v28, %v2595_v52  ;;  %v2473_v28 = vld [vmem:[#allocation2 + $0x580] ss:$8 sps:$4 sm:$0xff]  }
  0x99   :  { %1715 = vmatprep.subr.bf16.mxu1 %v2403_v43  ;;  %v2466_v43 = vld [vmem:[#allocation2 + $0x494] ss:$8 sps:$4 sm:$0xff]  }
  0x9b   :  { %1675 = vmatpush1.bf16.msra.mxu0 %v2398_v44  ;;  %v2461_v44 = vld [vmem:[#allocation2 + $0x5a0] ss:$8 sps:$4 sm:$0xff]  }
  0x9c   :  { %1676 = vmatprep.subr.bf16.mxu0 %v2406_v12  ;;  %1716 = vmatpush1.bf16.msra.mxu1 %v2401_v46  ;;  %v213_v12 = vadd.f32 %v175_v41, %v131_v39  ;;  %v2472_v46 = vld [vmem:[#allocation2 + $0x484] ss:$8 sps:$4 sm:$0xff]   ;;  %v1802_v39 = vld [vmem:[%s2850_s5 + $0x58] sm:$0xff]  ;;  %v1817_v41 = vld [vmem:[%s2850_s5 + $0xd0] sm:$0xff] }
  0x9d   :  { %1717 = vmatprep.subr.bf16.mxu1 %v2409_v53  ;;  %v2475_v53 = vld [vmem:[#allocation2 + $0x584] ss:$8 sps:$4 sm:$0xff]  }
  0x9e   :  { %v226_v54 = vmax.f32 %v213_v12, 0.0  ;;  %v1798_v12 = vld [vmem:[%s2850_s5 + $0x38] sm:$0xff] }
  0x9f   :  { %1677 = vmatpush1.bf16.msra.mxu0 %v2404_v56  ;;  %v2470_v56 = vld [vmem:[#allocation2 + $0x480] ss:$8 sps:$4 sm:$0xff]  }
  0xa0   :  { %1678 = vmatprep.subr.bf16.mxu0 %v2412_v58  ;;  %1718 = vmatpush1.bf16.msra.mxu1 %v2407_v61  ;;  %v239_v58 = vpack.c.bf16 %v226_v54, %v226_v54  ;;  %v241_v61 = vpack.c.bf16 %v228_v60, %v228_v60  ;;  %v1795_v54 = vld [vmem:[%s2850_s5 + $0x20] sm:$0xff]  ;;  %v1809_v60 = vld [vmem:[%s2850_s5 + $0x90] sm:$0xff] }
  0xa1   :  { %1719 = vmatprep.subr.bf16.mxu1 %v2415_v63  ;;  %v2479_v63 = vld [vmem:[#allocation2 + $0x660] ss:$8 sps:$4 sm:$0xff]  }
  0xa3   :  { %1679 = vmatpush1.bf16.msra.mxu0 %v2410_v0  ;;  %v2533_v0 = vmov 0  }
  0xa4   :  { %1680 = vmatprep.subr.bf16.mxu0 %v2418_v2  ;;  %1720 = vmatpush1.bf16.msra.mxu1 %v2413_v4  ;;  %v2484_v2 = vld [vmem:[#allocation2 + $0x654] ss:$8 sps:$4 sm:$0xff]   ;;  %v2482_v4 = vld [vmem:[#allocation2 + $0x650] ss:$8 sps:$4 sm:$0xff]  }
  0xa5   :  { %1721 = vmatprep.subr.bf16.mxu1 %v2421_v3  ;;  %v2487_v3 = vld [vmem:[#allocation2 + $0x644] ss:$8 sps:$4 sm:$0xff]  }
  0xa7   :  { %1681 = vmatpush1.bf16.msra.mxu0 %v2416_v5  ;;  %v2485_v5 = vld [vmem:[#allocation2 + $0x640] ss:$8 sps:$4 sm:$0xff]  }
  0xa8   :  { %1682 = vmatprep.subr.bf16.mxu0 %v2424_v6  ;;  %1722 = vmatpush1.bf16.msra.mxu1 %v2419_v7  ;;  %v2490_v6 = vld [vmem:[#allocation2 + $0x634] ss:$8 sps:$4 sm:$0xff]   ;;  %v2488_v7 = vld [vmem:[#allocation2 + $0x630] ss:$8 sps:$4 sm:$0xff]  }
  0xa9   :  { %1723 = vmatprep.subr.bf16.mxu1 %v2427_v8  ;;  %v2493_v8 = vld [vmem:[#allocation2 + $0x624] ss:$8 sps:$4 sm:$0xff]  }
  0xab   :  { %1683 = vmatpush1.bf16.msra.mxu0 %v2422_v9  ;;  %v2491_v9 = vld [vmem:[#allocation2 + $0x620] ss:$8 sps:$4 sm:$0xff]  }
  0xac   :  { %1684 = vmatprep.subr.bf16.mxu0 %v2430_v10  ;;  %1724 = vmatpush1.bf16.msra.mxu1 %v2425_v13  ;;  %v2496_v10 = vld [vmem:[#allocation2 + $0x614] ss:$8 sps:$4 sm:$0xff]   ;;  %v2494_v13 = vld [vmem:[#allocation2 + $0x610] ss:$8 sps:$4 sm:$0xff]  }
  0xad   :  { %1725 = vmatprep.subr.bf16.mxu1 %v2433_v14  ;;  %v2499_v14 = vld [vmem:[#allocation2 + $0x604] ss:$8 sps:$4 sm:$0xff]  }
  0xaf   :  { %1685 = vmatpush2.bf16.msra.mxu0 %v2428_v15  ;;  %v230_v15 = vmax.f32 %v2701_v1, 0.0 }
  0xb0   :  { %1686 = vmatprep.subr.bf16.mxu0 %v2436_v16  ;;  %1726 = vmatpush2.bf16.msra.mxu1 %v2431_v17  ;;  %v2497_v16 = vld [vmem:[#allocation2 + $0x600] ss:$8 sps:$4 sm:$0xff]  }
  0xb1   :  { %1727 = vmatprep.subr.bf16.mxu1 %v2439_v40  ;;  %v243_v17 = vpack.c.bf16 %v230_v15, %v230_v15  ;;  %v452_v40 = vld [vmem:[%s2849_s4] sm:$0x3] }
  0xb3   :  { %1687 = vmatpush2.bf16.msra.mxu0 %v2434_v18  ;;  %v457_v18 = vrot.slane %v452_v40, %v2595_v52  ;;  %v1821_v52 = vld [vmem:[%s2850_s5 + $0xf0] sm:$0xff] }
  0xb4   :  { %1688 = vmatprep.subr.bf16.mxu0 %v2442_v19  ;;  %1728 = vmatpush2.bf16.msra.mxu1 %v2437_v20  ;;  %v461_v19 = vrot.slane %v452_v40, %v2581_v45  ;;  %v1806_v45 = vld [vmem:[%s2850_s5 + $0x78] sm:$0xff] }
  0xb5   :  { %1729 = vmatprep.subr.bf16.mxu1 %v2445_v21 }
  0xb7   :  { %1689 = vmatpush2.bf16.msra.mxu0 %v2440_v22 }
  0xb8   :  { %1690 = vmatprep.subr.bf16.mxu0 %v2448_v23  ;;  %1730 = vmatpush2.bf16.msra.mxu1 %v2443_v24 }
  0xb9   :  { %1731 = vmatprep.subr.bf16.mxu1 %v2451_v25 }
  0xbb   :  { %1691 = vmatpush2.bf16.msra.mxu0 %v2446_v51 }
  0xbc   :  { %1692 = vmatprep.subr.bf16.mxu0 %v2454_v26  ;;  %1732 = vmatpush2.bf16.msra.mxu1 %v2449_v29  ;;  %v1822_v29 = vld [vmem:[%s2850_s5 + $0xf8] sm:$0xff] }
  0xbd   :  { %1733 = vmatprep.subr.bf16.mxu1 %v2457_v30 }
  0xbf   :  { %1693 = vmatpush2.bf16.msra.mxu0 %v2452_v55  ;;  %v1805_v55 = vld [vmem:[%s2850_s5 + $0x70] sm:$0xff] }
  0xc0   :  { %1694 = vmatprep.subr.bf16.mxu0 %v2460_v33  ;;  %1734 = vmatpush2.bf16.msra.mxu1 %v2455_v36  ;;  %v1819_v36 = vld [vmem:[%s2850_s5 + $0xe0] sm:$0xff] }
  0xc1   :  { %1735 = vmatprep.subr.bf16.mxu1 %v2463_v38  ;;  %v1818_v38 = vld [vmem:[%s2850_s5 + $0xd8] sm:$0xff] }
  0xc3   :  { %1695 = vmatpush2.bf16.msra.mxu0 %v2458_v42  ;;  %v1801_v42 = vld [vmem:[%s2850_s5 + $0x50] sm:$0xff] }
  0xc4   :  { %1696 = vmatprep.subr.bf16.mxu0 %v2466_v43  ;;  %1736 = vmatpush2.bf16.msra.mxu1 %v2461_v44  ;;  %v1816_v43 = vld [vmem:[%s2850_s5 + $0xc8] sm:$0xff]  ;;  %v1799_v44 = vld [vmem:[%s2850_s5 + $0x40] sm:$0xff] }
  0xc5   :  { %1737 = vmatprep.subr.bf16.mxu1 %v2469_v47  ;;  %v1814_v47 = vld [vmem:[%s2850_s5 + $0xb8] sm:$0xff] }
  0xc7   :  { %1697 = vmatpush2.bf16.msra.mxu0 %v2464_v48  ;;  %v1813_v48 = vld [vmem:[%s2850_s5 + $0xb0] sm:$0xff] }
  0xc8   :  { %1698 = vmatprep.subr.bf16.mxu0 %v2472_v46  ;;  %1738 = vmatpush2.bf16.msra.mxu1 %v2467_v50  ;;  %v1797_v46 = vld [vmem:[%s2850_s5 + $0x30] sm:$0xff]  ;;  %v1796_v50 = vld [vmem:[%s2850_s5 + $0x28] sm:$0xff] }
  0xc9   :  { %1739 = vmatprep.subr.bf16.mxu1 %v2475_v53  ;;  %v1811_v53 = vld [vmem:[%s2850_s5 + $0xa0] sm:$0xff] }
  0xcb   :  { %1699 = vmatpush2.bf16.msra.mxu0 %v2470_v56  ;;  %v1810_v56 = vld [vmem:[%s2850_s5 + $0x98] sm:$0xff] }
  0xcc   :  { %1750 = vmatprep.subr.bf16.mxu0 %v2478_v57  ;;  %1740 = vmatpush2.bf16.msra.mxu1 %v2473_v28  ;;  %v1794_v57 = vld [vmem:[%s2850_s5 + $0x18] sm:$0xff]  ;;  %v1793_v28 = vld [vmem:[%s2850_s5 + $0x10] sm:$0xff] }
  0xcd   :  { %2149 = vmatprep.subr.mxu1 %v1822_v29 }
  0xce   :  { %1701 = vmatmul.mubr.bf16.vlgmr.msra.gmra.mxu0 %v239_v58  ;;  %v1808_v58 = vld [vmem:[%s2850_s5 + $0x88] sm:$0xff] }
  0xcf   :  { %1751 = vmatpush1.bf16.msra.mxu0 %v2476_v59  ;;  %1782 = vmatprep.mubr.bf16.mxu0 %v2533_v0  ;;  %v1792_v59 = vld [vmem:[%s2850_s5 + $0x8] sm:$0xff] }
  0xd0   :  { %1742 = vmatmul.mubr.bf16.vlgmr.msra.gmra.mxu1 %v241_v61  ;;  %1752 = vmatprep.subr.bf16.mxu0 %v2481_v62  ;;  %v1807_v61 = vld [vmem:[%s2850_s5 + $0x80] sm:$0xff] }
  0xd1   :  { %2150 = vmatpush3.msra.mxu1 %v1806_v45  ;;  %v1791_v62 = vld [vmem:[%s2850_s5] sm:$0xff] }
  0xd2   :  { %2151 = vmatprep.subr.mxu1 %v1821_v52  ;;  %v2148_v52 = vld [vmem:[%s2851_s6] ss:$0 sm:$0xff] }
  0xd3   :  { %1753 = vmatpush1.bf16.msra.mxu0 %v2479_v63  ;;  %2152 = vmatpush3.msra.mxu1 %v1805_v55 }
  0xd4   :  { %1754 = vmatprep.subr.bf16.mxu0 %v2484_v2  ;;  %2153 = vmatprep.subr.mxu1 %v1820_v32 }
  0xd5   :  { %2154 = vmatpush3.msra.mxu1 %v1804_v34 }
  0xd6   :  { %2155 = vmatprep.subr.mxu1 %v1819_v36 }
  0xd7   :  { %1755 = vmatpush1.bf16.msra.mxu0 %v2482_v4  ;;  %2156 = vmatpush3.msra.mxu1 %v1803_v37 }
  0xd8   :  { %1756 = vmatprep.subr.bf16.mxu0 %v2487_v3  ;;  %2157 = vmatprep.subr.mxu1 %v1818_v38 }
  0xd9   :  { %2158 = vmatpush3.msra.mxu1 %v1802_v39 }
  0xda   :  { %2159 = vmatprep.subr.mxu1 %v1817_v41 }
  0xdb   :  { %1757 = vmatpush1.bf16.msra.mxu0 %v2485_v5  ;;  %2160 = vmatpush3.msra.mxu1 %v1801_v42 }
  0xdc   :  { %1758 = vmatprep.subr.bf16.mxu0 %v2490_v6  ;;  %2161 = vmatprep.subr.mxu1 %v1816_v43 }
  0xdd   :  { %2162 = vmatpush3.msra.mxu1 %v1800_v11 }
  0xde   :  { %2163 = vmatprep.subr.mxu1 %v1815_v27 }
  0xdf   :  { %1759 = vmatpush1.bf16.msra.mxu0 %v2488_v7  ;;  %2164 = vmatpush3.msra.mxu1 %v1799_v44 }
  0xe0   :  { %1760 = vmatprep.subr.bf16.mxu0 %v2493_v8  ;;  %2165 = vmatprep.subr.mxu1 %v1814_v47 }
  0xe1   :  { %2166 = vmatpush3.msra.mxu1 %v1798_v12 }
  0xe2   :  { %2167 = vmatprep.subr.mxu1 %v1813_v48 }
  0xe3   :  { %1761 = vmatpush1.bf16.msra.mxu0 %v2491_v9  ;;  %2168 = vmatpush3.msra.mxu1 %v1797_v46 }
  0xe4   :  { %1762 = vmatprep.subr.bf16.mxu0 %v2496_v10  ;;  %2169 = vmatprep.subr.mxu1 %v1812_v49 }
  0xe5   :  { %2170 = vmatpush3.msra.mxu1 %v1796_v50 }
  0xe6   :  { %2171 = vmatprep.subr.mxu1 %v1811_v53 }
  0xe7   :  { %1763 = vmatpush1.bf16.msra.mxu0 %v2494_v13  ;;  %2172 = vmatpush3.msra.mxu1 %v1795_v54 }
  0xe8   :  { %1764 = vmatprep.subr.bf16.mxu0 %v2499_v14  ;;  %2173 = vmatprep.subr.mxu1 %v1810_v56 }
  0xe9   :  { %2174 = vmatpush3.msra.mxu1 %v1794_v57 }
  0xea   :  { %2175 = vmatprep.subr.mxu1 %v1809_v60 }
  0xeb   :  { %1765 = vmatpush1.bf16.msra.mxu0 %v2497_v16  ;;  %2176 = vmatpush3.msra.mxu1 %v1793_v28 }
  0xec   :  { %2177 = vmatprep.subr.mxu1 %v1808_v58 }
  0xed   :  { %2178 = vmatpush3.msra.mxu1 %v1792_v59 }
  0xee   :  { %1783 = vmatmul.mubr.bf16.vlgmr.msra.gmra.mxu0 %v243_v17  ;;  %2179 = vmatprep.subr.mxu1 %v1807_v61 }
  0xef   :  { %2180 = vmatpush3.msra.mxu1 %v1791_v62 }
 0x10e   :  { %v1538_v20 = vpop.f32.mrf.mxu0 }
 0x10f   :  { %v1539_v21 = vadd.f32 %v1538_v20, %v457_v18  ;;  %v1579_v23 = vpop.f32.mrf.mxu1 }
 0x110   :  { %v1540_v22 = vpop.f32.mrf.mxu0 }
 0x111   :  { %v1541_v24 = vadd.f32 %v1540_v22, %v461_v19  ;;  %v2723_v1 = vadd.f32 %v1579_v23, %v1539_v21  ;;  %v1581_v51 = vpop.f32.mrf.mxu1 }
 0x112   :  { %v1542_v25 = vpop.f32.mrf.mxu0 }
 0x113   :  { %v2725_v26 = vadd.f32 %v1581_v51, %v1541_v24  ;;  %v1583_v31 = vpop.f32.mrf.mxu1 }
 0x114   :  { %v1543_v30 = vpop.f32.mrf.mxu0  ;;  %v1901_v31 = vand.u32 127, %v58_v35 }
 0x115   :  { %v1584_v33 = vpop.f32.mrf.mxu1 }
 0x116   :  { %vm1903_vm0 = vcmp.ge.s32.totalorder %v1901_v31, 6  ;;  %vm1904_vm1 = vcmp.lt.s32.totalorder %v1901_v31, 11  ;;  %vm1902_vm3 = vcmp.lt.s32.totalorder %v1901_v31, 6 }
 0x117   :  { %vm2829_vm2 = vmand %vm1903_vm0, %vm1904_vm1 }
 0x14e   :  { %v1620_v63 = vpop.f32.mrf.mxu0 }
 0x14f   :  { %v1621_v0 = vadd.f32 %v1620_v63, %v2723_v1  ;;  %v1661_v4 = vpop.f32.mrf.mxu1 }
 0x150   :  { %v1622_v2 = vpop.f32.mrf.mxu0 }
 0x151   :  { %v1623_v3 = vadd.f32 %v1622_v2, %v2725_v26  ;;  %v1662_v5 = vadd.f32 %v1661_v4, %v1621_v0  ;;  %v1663_v7 = vpop.f32.mrf.mxu1 }
 0x152   :  { %v1624_v6 = vpop.f32.mrf.mxu0 }
 0x153   :  { %v1664_v8 = vadd.f32 %v1663_v7, %v1623_v3  ;;  %v1665_v10 = vpop.f32.mrf.mxu1 }
 0x154   :  { %v1625_v9 = vpop.f32.mrf.mxu0 }
 0x155   :  { %v1666_v13 = vpop.f32.mrf.mxu1 }
 0x18e   :  { %v1702_v14 = vpop.f32.mrf.mxu0 }
 0x18f   :  { %v1703_v22 = vadd.f32 %v1702_v14, %v1662_v5 }
 0x190   :  { %v1704_v15 = vpop.f32.mrf.mxu0  ;;  %v1743_v16 = vpop.f32.mrf.mxu1 }
 0x191   :  { %v1705_v21 = vadd.f32 %v1704_v15, %v1664_v8  ;;  %v1744_v1 = vadd.f32 %v1743_v16, %v1703_v22 }
 0x192   :  { %v1706_v17 = vpop.f32.mrf.mxu0  ;;  %v1745_v40 = vpop.f32.mrf.mxu1 }
 0x193   :  { %v1746_v24 = vadd.f32 %v1745_v40, %v1705_v21 }
 0x194   :  { %v1707_v18 = vpop.f32.mrf.mxu0  ;;  %v1747_v19 = vpop.f32.mrf.mxu1 }
 0x196   :  { %v1748_v20 = vpop.f32.mrf.mxu1 }
 0x1ae   :  { %v1784_v23 = vpop.f32.mrf.mxu0 }
 0x1af   :  { %v1785_v26 = vadd.f32 %v1784_v23, %v1744_v1 }
 0x1b0   :  { %v1786_v25 = vpop.f32.mrf.mxu0 }
 0x1b1   :  { %v1787_v51 = vadd.f32 %v1786_v25, %v1746_v24 }
 0x1b2   :  { %v1788_v29 = vpop.f32.mrf.mxu0 }
 0x1b3   :  { %1894 = vmatprep.mubr.f32.mxu1 %v1787_v51 }
 0x1b4   :  { %v1789_v30 = vpop.f32.mrf.mxu0  ;;  %1895 = vmatmul.mubr.f32.vlgmr.msra.gmra.mxu1 %v1785_v26 }
 0x274   :  { %v2181_v45 = vpop.f32.mrf.mxu1 }
 0x276   :  { %v2182_v55 = vpop.f32.mrf.mxu1 }
 0x277   :  { %v2183_v32 = vadd.f32 %v2182_v55, %v2181_v45 }
 0x279   :  { %v1897_v34 = vadd.f32 %v2183_v32, %v2148_v52 }
 0x27b   :  { %v1919_v36 = vsel %vm2829_vm2, %v1897_v34, -1e+30  ;;  %v1906_v35 = vsel %vm1902_vm3, %v1897_v34, -1e+30 }
 0x27c   :  { %1920 = vmax.xlane.f32.xlu0 %v1919_v36 }
 0x280   :  { %1907 = vmax.xlane.f32.xlu0 %v1906_v35 }
 0x305   :  { %v1921_v37 = vpop.xlane.xlu0 %1920 }
 0x306   :  { %v1922_v38 = vsub.f32 %v1897_v34, %v1921_v37 }
 0x308   :  { %v1923_v39 = vmul.f32 1.442695, %v1922_v38 }
 0x309   :  { %v1908_v41 = vpop.xlane.xlu0 %1907 }
 0x30a   :  { %2500 = vpow2.f32 %v1923_v39  ;;  %v1909_v42 = vsub.f32 %v1897_v34, %v1908_v41 }
 0x30c   :  { %v1910_v43 = vmul.f32 1.442695, %v1909_v42 }
 0x30e   :  { %2502 = vpow2.f32 %v1910_v43 }
 0x317   :  { %v2501_v11 = vpop.eup %2500 }
 0x318   :  { %v1925_v27 = vsel %vm2829_vm2, %v2501_v11, 0.0 }
 0x319   :  { %1926 = vadd.xlane.f32.xlu1 %v1925_v27 }
 0x31b   :  { %v2503_v44 = vpop.eup %2502 }
 0x31c   :  { %v1912_v47 = vsel %vm1902_vm3, %v2503_v44, 0.0 }
 0x31d   :  { %1913 = vadd.xlane.f32.xlu1 %v1912_v47 }
 0x3a2   :  { %v1927_v12 = vpop.xlane.xlu1 %1926 }
 0x3a3   :  { %2504 = vrcp.f32 %v1927_v12 }
 0x3a6   :  { %v1914_v48 = vpop.xlane.xlu1 %1913 }
 0x3a7   :  { %2506 = vrcp.f32 %v1914_v48 }
 0x3b0   :  { %v2505_v46 = vpop.eup %2504 }
 0x3b1   :  { %v1929_v49 = vmul.f32 %v2505_v46, %v1925_v27 }
 0x3b3   :  { %v1930_v50 = vmax.f32 %v1929_v49, 0.0001 }
 0x3b4   :  { %v2507_v53 = vpop.eup %2506 }
 0x3b5   :  { %v1916_v54 = vmul.f32 %v2507_v53, %v1912_v47  ;;  %v1931_v56 = vmin.f32 %v1930_v50, 0.9999 }
 0x3b7   :  { %v1917_v57 = vmax.f32 %v1916_v54, 0.0001  ;;  %v1932_v28 = vsel %vm2829_vm2, %v1931_v56, %v1897_v34 }
 0x3b9   :  { %v1918_v60 = vmin.f32 %v1917_v57, 0.9999 }
 0x3bb   :  { %v1933_v58 = vsel %vm1902_vm3, %v1918_v60, %v1932_v28 }
 0x3bc   :  { %1934 = vst [vmem:[%s2852_s7] sm:$0xff] %v1933_v58 }
 0x3bd   :  { %1939 = vsyncpa [#allocation3], 1 }

</bundles_post_ra>
